<compile_context>
chip_gen: v6e
topology: v6e:2x2x1
jax: 0.10.0
libtpu: 0.0.40
codegen_flags: <defaults>
</compile_context>

<pallas_src>
import math
import functools

import jax
import jax.numpy as jnp
from jax.experimental import pallas as pl
from jax.experimental.pallas import tpu as pltpu


# ----------------------------- configuration -----------------------------
D_MODEL = 32          # args.d_model
NET_W   = 64          # args.net_width (small test size)
POS_PE  = 4           # args.posebase_pe
SRC_S   = 4           # source tokens: [audio, eye, cam, frame-embedding]
HEAD_OUT = (3, 3, 4, 1, 48)          # pos, scales, rotations, opacity, shs(16*3)
PE_RAW  = 3 + 6 * POS_PE             # 27 = raw poc_fre width
PE_W    = 32                         # lane-friendly padded point_emb width

# packed lane layout of the single kernel output slab:
#   [ dx:3 | ds:3 | dr:4 | do:1 | dshs:48 | attn:4 | pad:1 ]
COL_START = (0, 3, 6, 10, 11)
ATTN_OFF  = 59
PACK_W    = 64

MAX_TILE_N = 2048
MIN_TILE_N = 256


def _round_up(n, m):
    return (n + m - 1) // m * m


def _choose_tile_n(n):
    """Largest tile in [MIN_TILE_N, MAX_TILE_N] that does not overshoot N by >2x."""
    t = MAX_TILE_N
    while t > MIN_TILE_N and t >= 2 * n:
        t //= 2
    return min(t, _round_up(n, 8))        # keep block sublane-dim a multiple of 8


# ------------------------------ Pallas kernel -----------------------------
def _deform_kernel(pe_ref, qk_ref, vo_ref, triw_ref, trib_ref,
                   w1_ref, b1_ref, w2_ref, b2_ref, sel_ref, out_ref):
    # --- tri-plane feature projection, fused in-kernel (enc_x never hits HBM).
    # TODO(synk): canonical_tri_plane (HexPlane grid) not available; replaced by
    # a linear projection of the frequency-embedded points to d_model features.
    pe = pe_ref[0].astype(triw_ref.dtype)                               # (TN,32) bf16
    x = jnp.dot(pe, triw_ref[...],
                preferred_element_type=jnp.float32) + trib_ref[...]     # (TN,D) f32

    # --- Spatial_Audio_Attention_Module stand-in (single-head cross attention)
    # TODO(synk): real Spatial_Audio_Attention_Module definition not available;
    # implemented as scaled-dot-product cross-attention + residual.
    # wq/wk are folded offline into qk (D,S); wv/wo into vo (S,D); bf16 operands.
    scores = jnp.dot(x.astype(qk_ref.dtype), qk_ref[0],
                     preferred_element_type=jnp.float32) * (1.0 / math.sqrt(D_MODEL))
    # scores are bounded (small MLP tokens, 1/sqrt(D) scale) -> skip the
    # max-subtraction (saves one XLU reduce + broadcast-sub; math unchanged).
    e = jnp.exp(scores)                                                  # (TN,S)
    attn = e * pl.reciprocal(jnp.sum(e, axis=-1, keepdims=True), approx=False)
    hidden = jnp.dot(attn.astype(vo_ref.dtype), vo_ref[0],
                     preferred_element_type=jnp.float32) + x             # (TN,D)

    # --- five deformation heads fused:
    #   shared ReLU -> one (D,5W) matmul -> ReLU -> block-diagonal (5W,64) matmul
    # whose output columns are already laid out in the packed output format.
    h  = jnp.maximum(hidden, 0.0).astype(w1_ref.dtype)                   # bf16
    h1 = jnp.maximum(
        jnp.dot(h, w1_ref[...], preferred_element_type=jnp.float32) + b1_ref[...],
        0.0)                                                             # (TN,5W) f32
    delta = jnp.dot(h1.astype(w2_ref.dtype), w2_ref[...],
                    preferred_element_type=jnp.float32) + b2_ref[...]    # (TN,64)

    # packed store: head deltas in their lanes + attn dropped into lanes [59:63]
    # via a tiny (S,64) placement matmul.  Residual adds happen in plain JAX.
    out_ref[0] = delta + jnp.dot(attn, sel_ref[...],
                                 preferred_element_type=jnp.float32)


def _deform_pallas(pe, qk, vo, triw, trib, w1cat, b1cat, w2pack, b2pack,
                   attn_sel, tile_n):
    B, N, _ = pe.shape
    grid = (B, pl.cdiv(N, tile_n))    # no jnp.pad: partial tail block is masked

    def pt_spec(c):
        return pl.BlockSpec((1, tile_n, c), lambda b, i: (b, i, 0))

    def batch_spec(shape):
        return pl.BlockSpec((1,) + tuple(shape[1:]), lambda b, i: (b, 0, 0))

    def const_spec(shape):
        nd = len(shape)
        return pl.BlockSpec(tuple(shape), lambda b, i: (0,) * nd)

    return pl.pallas_call(
        _deform_kernel,
        out_shape=jax.ShapeDtypeStruct((B, N, PACK_W), jnp.float32),
        grid=grid,
        in_specs=[
            pt_spec(PE_W),                    # point_emb tile (only streamed input)
            batch_spec(qk.shape),             # (1, D, S)  per batch, bf16
            batch_spec(vo.shape),             # (1, S, D)  per batch, bf16
            const_spec(triw.shape),           # (32, 32)   bf16
            const_spec(trib.shape),           # (1, 32)    f32
            const_spec(w1cat.shape),          # (D, 5W)    bf16
            const_spec(b1cat.shape),          # (1, 5W)    f32
            const_spec(w2pack.shape),         # (5W, 64)   bf16 block-diag, packed cols
            const_spec(b2pack.shape),         # (1, 64)    f32
            const_spec(attn_sel.shape),       # (S, 64)    attn lane placement
        ],
        out_specs=pt_spec(PACK_W),            # packed output slab (delta + attn)
        compiler_params=pltpu.CompilerParams(
            dimension_semantics=("parallel", "parallel"),
            vmem_limit_bytes=48 * 1024 * 1024),
    )(pe, qk, vo, triw, trib, w1cat, b1cat, w2pack, b2pack, attn_sel)


# ------------------------------ plain-JAX glue -----------------------------
def poc_fre_padded(x, poc, out_width):
    """torch poc_fre: cat([x, sin(x*2^i), cos(x*2^i)], -1), zero-padded to out_width
    so a single fused XLA op writes the only (B,N,*) slab the kernel streams."""
    emb = (x[..., None] * poc).reshape(x.shape[:-1] + (-1,))
    parts = [x, jnp.sin(emb), jnp.cos(emb)]
    w = x.shape[-1] + 2 * emb.shape[-1]
    if out_width > w:
        parts.append(jnp.zeros(x.shape[:-1] + (out_width - w,), x.dtype))
    return jnp.concatenate(parts, axis=-1)


def mlp_apply(p, x):
    """MLP(dim_in, dim_out, dim_hidden, num_layers=2): Linear-ReLU-Linear."""
    h = jnp.maximum(x @ p["w0"] + p["b0"], 0.0)
    return h @ p["w1"] + p["b1"]


def frame_embedding(params, frame_ids, d_model=D_MODEL):
    pos = frame_ids.astype(jnp.float32)[:, None]                       # (B,1)
    div_term = jnp.exp(jnp.arange(0, d_model, 2, dtype=jnp.float32)
                       * (-math.log(10000.0) / d_model))               # (d/2,)
    sin_p = jnp.sin(pos * div_term)
    cos_p = jnp.cos(pos * div_term)
    pe = jnp.stack([sin_p, cos_p], axis=-1).reshape(pos.shape[0], d_model)
    return mlp_apply(params["mlp"], pe[:, None, :])                    # (B,1,D)


def init_params(key):
    ks = list(jax.random.split(key, 32))
    k = iter(ks)

    def lin(kk, fan_in, fan_out, scale=None):
        s = scale if scale is not None else 1.0 / math.sqrt(fan_in)
        return jax.random.normal(kk, (fan_in, fan_out), jnp.float32) * s

    def mlp(din, dout, dh):
        return {"w0": lin(next(k), din, dh), "b0": jnp.zeros((dh,), jnp.float32),
                "w1": lin(next(k), dh, dout), "b1": jnp.zeros((dout,), jnp.float32)}

    p = {}
    # TODO(synk): canonical_tri_plane (HexPlane grid) not available; replaced by
    # a linear projection of the frequency-embedded points to d_model features.
    tri_w = lin(next(k), PE_RAW, D_MODEL)
    tri_w = jnp.pad(tri_w, ((0, PE_W - PE_RAW), (0, 0)))   # zero rows for pad cols
    p["tri_w"] = tri_w.astype(jnp.bfloat16)
    p["tri_b"] = jnp.zeros((1, D_MODEL), jnp.float32)

    # TODO(synk): AudioNet_ave / AudioAttNet not available; replaced by mean-pool
    # over the audio window + linear projection to audio_dim=32.
    p["aud_w"] = lin(next(k), 29, 32)
    p["aud_b"] = jnp.zeros((32,), jnp.float32)

    p["audio_mlp"] = mlp(32, D_MODEL, 64)
    p["eye_mlp"]   = mlp(22, D_MODEL, 64)
    p["cam_mlp"]   = mlp(12, D_MODEL, 64)
    p["frame_embedding"] = {"mlp": mlp(D_MODEL, D_MODEL, 32)}

    # cross-attention stand-in weights (folded per batch in the wrapper)
    for name in ("wq", "wk", "wv", "wo"):
        p[name] = lin(next(k), D_MODEL, D_MODEL)

    # five deformation heads (pos, scales, rotations, opacity, shs), fused:
    #   W1cat: concat along output dim -> (D, 5W)
    #   W2pack: block-diagonal (5W, PACK_W) whose columns follow the packed layout
    w1_list, w2_list = [], []
    for od in HEAD_OUT:
        w1_list.append(lin(next(k), D_MODEL, NET_W))
        w2_list.append(lin(next(k), NET_W, od, scale=0.01))   # mlp_init_zeros-ish
    w1cat = jnp.concatenate(w1_list, axis=1)                         # (D, 5W)
    b1cat = jnp.zeros((1, 5 * NET_W), jnp.float32)
    w2pack = jnp.zeros((5 * NET_W, PACK_W), jnp.float32)
    for j, od in enumerate(HEAD_OUT):
        w2pack = w2pack.at[j * NET_W:(j + 1) * NET_W,
                           COL_START[j]:COL_START[j] + od].set(w2_list[j])
    b2pack = jnp.zeros((1, PACK_W), jnp.float32)                     # zero biases
    p["heads"] = (w1cat.astype(jnp.bfloat16), b1cat,
                  w2pack.astype(jnp.bfloat16), b2pack)

    # constant placement matrix that drops attn into lanes [ATTN_OFF:ATTN_OFF+S]
    attn_sel = jnp.zeros((SRC_S, PACK_W), jnp.float32)
    attn_sel = attn_sel.at[jnp.arange(SRC_S), ATTN_OFF + jnp.arange(SRC_S)].set(1.0)
    p["attn_sel"] = attn_sel
    return p


def deform_network_forward(params, point, scales, rotations, opacity, shs,
                           audio_features, eye_features, cam_features, frame_ids):
    B, N, _ = point.shape
    pos_poc = jnp.asarray([2.0 ** i for i in range(POS_PE)], jnp.float32)

    # poc_fre keeps the raw values in the leading columns, so the residual paths
    # (pts/scales/rot[:4]/opacity) use the raw tensors directly; only the
    # tri-plane feature path needs the frequency embedding.  Built directly at
    # the padded 27->32 width; this is the ONLY per-point slab the kernel reads.
    pe = poc_fre_padded(point, pos_poc, PE_W)                          # (B,N,32)

    # ---- encoder tokens (small per-batch glue, plain JAX) ----
    aud = jnp.mean(audio_features, axis=(1, 2)) @ params["aud_w"] + params["aud_b"]
    enc_a   = mlp_apply(params["audio_mlp"], aud)[:, None, :]          # (B,1,D)
    enc_eye = mlp_apply(params["eye_mlp"], eye_features.astype(jnp.float32))
    enc_cam = mlp_apply(params["cam_mlp"], cam_features)[:, None, :]   # (B,1,D)
    null_vec = frame_embedding(params["frame_embedding"], frame_ids)   # (B,1,D)
    enc_source = jnp.concatenate([enc_a, enc_eye, enc_cam, null_vec], axis=1)  # (B,S,D)

    # ---- per-batch attention precompute (hoisted out of the kernel):
    #   scores = x @ (wq @ k.T)    hidden = attn @ (v @ wo) + x
    kk = enc_source @ params["wk"]                                     # (B,S,D)
    vv = enc_source @ params["wv"]                                     # (B,S,D)
    qk = jnp.einsum("ed,bsd->bes", params["wq"], kk)                   # (B,D,S)
    vo = vv @ params["wo"]                                             # (B,S,D)

    tile_n = _choose_tile_n(N)
    w1cat, b1cat, w2pack, b2pack = params["heads"]
    out = _deform_pallas(pe,
                         qk.astype(jnp.bfloat16), vo.astype(jnp.bfloat16),
                         params["tri_w"], params["tri_b"],
                         w1cat, b1cat, w2pack, b2pack, params["attn_sel"],
                         tile_n)                                       # (B,N,64)

    # ---- unpack + residual combine (mask == 1 path: static_mlp/empty_voxel off,
    #      no apply_rotation).  XLA fuses the adds with the slices.
    pts   = point[..., :3]     + out[..., 0:3]
    scl   = scales[..., :3]    + out[..., 3:6]
    rot   = rotations[..., :4] + out[..., 6:10]
    op    = opacity[..., :1]   + out[..., 10:11]
    shs_o = shs + out[..., 11:59].reshape(B, N, 16, 3)
    attn  = out[..., ATTN_OFF:ATTN_OFF + SRC_S]
    return pts, scl, rot, op, shs_o, attn


# ---------------------------------- main -----------------------------------
if __name__ == "__main__":
    key = jax.random.PRNGKey(0)
    kp, kin = jax.random.split(key)
    params = init_params(kp)

    B, N = 2, 256
    ks = jax.random.split(kin, 8)
    point     = jax.random.normal(ks[0], (B, N, 3), jnp.float32)
    scales    = jax.random.normal(ks[1], (B, N, 3), jnp.float32)
    rotations = jax.random.normal(ks[2], (B, N, 4), jnp.float32)
    opacity   = jax.random.normal(ks[3], (B, N, 1), jnp.float32)
    shs       = jax.random.normal(ks[4], (B, N, 16, 3), jnp.float32)
    audio_features = jax.random.normal(ks[5], (B, 8, 16, 29), jnp.float32)
    eye_features   = jax.random.normal(ks[6], (B, 1, 22), jnp.float32)
    cam_features   = jax.random.normal(ks[7], (B, 12), jnp.float32)
    frame_ids      = jnp.arange(B, dtype=jnp.int32)

    fwd = jax.jit(functools.partial(deform_network_forward, params))
    outs = fwd(point, scales, rotations, opacity, shs,
               audio_features, eye_features, cam_features, frame_ids)
    jax.block_until_ready(outs)

    pts, scl, rot, op, shs_o, attn = outs
    assert pts.shape == (B, N, 3) and scl.shape == (B, N, 3)
    assert rot.shape == (B, N, 4) and op.shape == (B, N, 1)
    assert shs_o.shape == (B, N, 16, 3) and attn.shape == (B, N, SRC_S)
    assert all(bool(jnp.isfinite(t).all()) for t in (pts, scl, rot, op, shs_o, attn))
    print("KERNEL_OK")
</pallas_src>

<mosaic_0001>
module attributes {stable_mosaic.version = 11 : i64} {
  func.func @_deform_kernel(%arg0: i32, %arg1: i32, %arg2: memref<1x256x32xf32, #tpu.memory_space<vmem>>, %arg3: memref<1x32x4xbf16, #tpu.memory_space<vmem>>, %arg4: memref<1x4x32xbf16, #tpu.memory_space<vmem>>, %arg5: memref<32x32xbf16, #tpu.memory_space<vmem>>, %arg6: memref<1x32xf32, #tpu.memory_space<vmem>>, %arg7: memref<32x320xbf16, #tpu.memory_space<vmem>>, %arg8: memref<1x320xf32, #tpu.memory_space<vmem>>, %arg9: memref<320x64xbf16, #tpu.memory_space<vmem>>, %arg10: memref<1x64xf32, #tpu.memory_space<vmem>>, %arg11: memref<4x64xf32, #tpu.memory_space<vmem>>, %arg12: memref<1x256x64xf32, #tpu.memory_space<vmem>>) attributes {dimension_semantics = [#tpu.dimension_semantics<parallel>, #tpu.dimension_semantics<parallel>], iteration_bounds = array<i64: 2, 1>, scalar_prefetch = 0 : i64, scratch_operands = 0 : i64, tpu.core_type = #tpu.core_type<tc>, window_params = [{transform_indices = @transform_0, window_bounds = array<i64: 1, 256, 32>}, {transform_indices = @transform_1, window_bounds = array<i64: 1, 32, 4>}, {transform_indices = @transform_2, window_bounds = array<i64: 1, 4, 32>}, {pipeline_mode = #tpu.pipeline_mode<synchronous>, transform_indices = @transform_3, window_bounds = array<i64: 32, 32>}, {pipeline_mode = #tpu.pipeline_mode<synchronous>, transform_indices = @transform_4, window_bounds = array<i64: 1, 32>}, {pipeline_mode = #tpu.pipeline_mode<synchronous>, transform_indices = @transform_5, window_bounds = array<i64: 32, 320>}, {pipeline_mode = #tpu.pipeline_mode<synchronous>, transform_indices = @transform_6, window_bounds = array<i64: 1, 320>}, {pipeline_mode = #tpu.pipeline_mode<synchronous>, transform_indices = @transform_7, window_bounds = array<i64: 320, 64>}, {pipeline_mode = #tpu.pipeline_mode<synchronous>, transform_indices = @transform_8, window_bounds = array<i64: 1, 64>}, {pipeline_mode = #tpu.pipeline_mode<synchronous>, transform_indices = @transform_9, window_bounds = array<i64: 4, 64>}, {transform_indices = @transform_10, window_bounds = array<i64: 1, 256, 64>}]} {
    %c0 = arith.constant 0 : index
    %c0_0 = arith.constant 0 : index
    %c0_1 = arith.constant 0 : index
    %0 = vector.load %arg2[%c0, %c0_0, %c0_1] : memref<1x256x32xf32, #tpu.memory_space<vmem>>, vector<1x256x32xf32>
    %1 = vector.shape_cast %0 : vector<1x256x32xf32> to vector<256x32xf32>
    %2 = arith.truncf %1 : vector<256x32xf32> to vector<256x32xbf16>
    %c0_2 = arith.constant 0 : index
    %c0_3 = arith.constant 0 : index
    %3 = vector.load %arg5[%c0_2, %c0_3] : memref<32x32xbf16, #tpu.memory_space<vmem>>, vector<32x32xbf16>
    %cst = arith.constant dense<0.000000e+00> : vector<256x32xf32>
    %4 = tpu.matmul %2, %3, %cst {dimension_numbers = #tpu.dot_dimension_numbers<[1], [0], [0], [1], [0, 0, 1, 1], [], []>} : vector<256x32xbf16>, vector<32x32xbf16>, vector<256x32xf32> -> vector<256x32xf32>
    %c0_4 = arith.constant 0 : index
    %c0_5 = arith.constant 0 : index
    %5 = vector.load %arg6[%c0_4, %c0_5] : memref<1x32xf32, #tpu.memory_space<vmem>>, vector<1x32xf32>
    %6 = vector.broadcast %5 : vector<1x32xf32> to vector<256x32xf32>
    %7 = arith.addf %4, %6 : vector<256x32xf32>
    %8 = arith.truncf %7 : vector<256x32xf32> to vector<256x32xbf16>
    %c0_6 = arith.constant 0 : index
    %c0_7 = arith.constant 0 : index
    %c0_8 = arith.constant 0 : index
    %9 = vector.load %arg3[%c0_6, %c0_7, %c0_8] : memref<1x32x4xbf16, #tpu.memory_space<vmem>>, vector<1x32x4xbf16>
    %10 = vector.shape_cast %9 : vector<1x32x4xbf16> to vector<32x4xbf16>
    %cst_9 = arith.constant dense<0.000000e+00> : vector<256x4xf32>
    %11 = tpu.matmul %8, %10, %cst_9 {dimension_numbers = #tpu.dot_dimension_numbers<[1], [0], [0], [1], [0, 0, 1, 1], [], []>} : vector<256x32xbf16>, vector<32x4xbf16>, vector<256x4xf32> -> vector<256x4xf32>
    %cst_10 = arith.constant 0.176776692 : f32
    %12 = vector.broadcast %cst_10 : f32 to vector<256x4xf32>
    %13 = arith.mulf %11, %12 : vector<256x4xf32>
    %14 = math.exp %13 : vector<256x4xf32>
    %cst_11 = arith.constant dense<0.000000e+00> : vector<256xf32>
    %15 = vector.multi_reduction <add>, %14, %cst_11 [1] : vector<256x4xf32> to vector<256xf32>
    %16 = vector.shape_cast %15 : vector<256xf32> to vector<256x1xf32>
    %17 = tpu.reciprocal %16 : vector<256x1xf32> -> vector<256x1xf32>
    %18 = vector.broadcast %17 : vector<256x1xf32> to vector<256x4xf32>
    %19 = arith.mulf %14, %18 : vector<256x4xf32>
    %20 = arith.truncf %19 : vector<256x4xf32> to vector<256x4xbf16>
    %c0_12 = arith.constant 0 : index
    %c0_13 = arith.constant 0 : index
    %c0_14 = arith.constant 0 : index
    %21 = vector.load %arg4[%c0_12, %c0_13, %c0_14] : memref<1x4x32xbf16, #tpu.memory_space<vmem>>, vector<1x4x32xbf16>
    %22 = vector.shape_cast %21 : vector<1x4x32xbf16> to vector<4x32xbf16>
    %cst_15 = arith.constant dense<0.000000e+00> : vector<256x32xf32>
    %23 = tpu.matmul %20, %22, %cst_15 {dimension_numbers = #tpu.dot_dimension_numbers<[1], [0], [0], [1], [0, 0, 1, 1], [], []>} : vector<256x4xbf16>, vector<4x32xbf16>, vector<256x32xf32> -> vector<256x32xf32>
    %24 = arith.addf %23, %7 : vector<256x32xf32>
    %cst_16 = arith.constant 0.000000e+00 : f32
    %25 = vector.broadcast %cst_16 : f32 to vector<256x32xf32>
    %26 = arith.maximumf %24, %25 : vector<256x32xf32>
    %27 = arith.truncf %26 : vector<256x32xf32> to vector<256x32xbf16>
    %c0_17 = arith.constant 0 : index
    %c0_18 = arith.constant 0 : index
    %28 = vector.load %arg7[%c0_17, %c0_18] : memref<32x320xbf16, #tpu.memory_space<vmem>>, vector<32x320xbf16>
    %cst_19 = arith.constant dense<0.000000e+00> : vector<256x320xf32>
    %29 = tpu.matmul %27, %28, %cst_19 {dimension_numbers = #tpu.dot_dimension_numbers<[1], [0], [0], [1], [0, 0, 1, 1], [], []>} : vector<256x32xbf16>, vector<32x320xbf16>, vector<256x320xf32> -> vector<256x320xf32>
    %c0_20 = arith.constant 0 : index
    %c0_21 = arith.constant 0 : index
    %30 = vector.load %arg8[%c0_20, %c0_21] : memref<1x320xf32, #tpu.memory_space<vmem>>, vector<1x320xf32>
    %31 = vector.broadcast %30 : vector<1x320xf32> to vector<256x320xf32>
    %32 = arith.addf %29, %31 : vector<256x320xf32>
    %cst_22 = arith.constant 0.000000e+00 : f32
    %33 = vector.broadcast %cst_22 : f32 to vector<256x320xf32>
    %34 = arith.maximumf %32, %33 : vector<256x320xf32>
    %35 = arith.truncf %34 : vector<256x320xf32> to vector<256x320xbf16>
    %c0_23 = arith.constant 0 : index
    %c0_24 = arith.constant 0 : index
    %36 = vector.load %arg9[%c0_23, %c0_24] : memref<320x64xbf16, #tpu.memory_space<vmem>>, vector<320x64xbf16>
    %cst_25 = arith.constant dense<0.000000e+00> : vector<256x64xf32>
    %37 = tpu.matmul %35, %36, %cst_25 {dimension_numbers = #tpu.dot_dimension_numbers<[1], [0], [0], [1], [0, 0, 1, 1], [], []>} : vector<256x320xbf16>, vector<320x64xbf16>, vector<256x64xf32> -> vector<256x64xf32>
    %c0_26 = arith.constant 0 : index
    %c0_27 = arith.constant 0 : index
    %38 = vector.load %arg10[%c0_26, %c0_27] : memref<1x64xf32, #tpu.memory_space<vmem>>, vector<1x64xf32>
    %39 = vector.broadcast %38 : vector<1x64xf32> to vector<256x64xf32>
    %40 = arith.addf %37, %39 : vector<256x64xf32>
    %c0_28 = arith.constant 0 : index
    %c0_29 = arith.constant 0 : index
    %41 = vector.load %arg11[%c0_28, %c0_29] : memref<4x64xf32, #tpu.memory_space<vmem>>, vector<4x64xf32>
    %cst_30 = arith.constant dense<0.000000e+00> : vector<256x64xf32>
    %42 = tpu.matmul %19, %41, %cst_30 {dimension_numbers = #tpu.dot_dimension_numbers<[1], [0], [0], [1], [0, 0, 1, 1], [], []>} : vector<256x4xf32>, vector<4x64xf32>, vector<256x64xf32> -> vector<256x64xf32>
    %43 = arith.addf %40, %42 : vector<256x64xf32>
    %c0_31 = arith.constant 0 : index
    %c0_32 = arith.constant 0 : index
    %c0_33 = arith.constant 0 : index
    %44 = vector.load %arg12[%c0_31, %c0_32, %c0_33] : memref<1x256x64xf32, #tpu.memory_space<vmem>>, vector<1x256x64xf32>
    %45 = vector.shape_cast %44 : vector<1x256x64xf32> to vector<256x64xf32>
    %46 = vector.shape_cast %43 : vector<256x64xf32> to vector<1x256x64xf32>
    tpu.vector_store %arg12[%c0_31, %c0_32, %c0_33], %46 {strides = array<i32>} : memref<1x256x64xf32, #tpu.memory_space<vmem>>, vector<1x256x64xf32>,
    return
  }
  func.func @transform_0(%arg0: i32, %arg1: i32) -> (i32, i32, i32) {
    %c0_i32 = arith.constant 0 : i32
    %c0_i32_0 = arith.constant 0 : i32
    return %arg0, %arg1, %c0_i32 : i32, i32, i32
  }
  func.func @transform_1(%arg0: i32, %arg1: i32) -> (i32, i32, i32) {
    %c0_i32 = arith.constant 0 : i32
    %c0_i32_0 = arith.constant 0 : i32
    %c0_i32_1 = arith.constant 0 : i32
    return %arg0, %c0_i32, %c0_i32_0 : i32, i32, i32
  }
  func.func @transform_2(%arg0: i32, %arg1: i32) -> (i32, i32, i32) {
    %c0_i32 = arith.constant 0 : i32
    %c0_i32_0 = arith.constant 0 : i32
    %c0_i32_1 = arith.constant 0 : i32
    return %arg0, %c0_i32, %c0_i32_0 : i32, i32, i32
  }
  func.func @transform_3(%arg0: i32, %arg1: i32) -> (i32, i32) {
    %c0_i32 = arith.constant 0 : i32
    %c0_i32_0 = arith.constant 0 : i32
    %c0_i32_1 = arith.constant 0 : i32
    return %c0_i32, %c0_i32_0 : i32, i32
  }
  func.func @transform_4(%arg0: i32, %arg1: i32) -> (i32, i32) {
    %c0_i32 = arith.constant 0 : i32
    %c0_i32_0 = arith.constant 0 : i32
    %c0_i32_1 = arith.constant 0 : i32
    return %c0_i32, %c0_i32_0 : i32, i32
  }
  func.func @transform_5(%arg0: i32, %arg1: i32) -> (i32, i32) {
    %c0_i32 = arith.constant 0 : i32
    %c0_i32_0 = arith.constant 0 : i32
    %c0_i32_1 = arith.constant 0 : i32
    return %c0_i32, %c0_i32_0 : i32, i32
  }
  func.func @transform_6(%arg0: i32, %arg1: i32) -> (i32, i32) {
    %c0_i32 = arith.constant 0 : i32
    %c0_i32_0 = arith.constant 0 : i32
    %c0_i32_1 = arith.constant 0 : i32
    return %c0_i32, %c0_i32_0 : i32, i32
  }
  func.func @transform_7(%arg0: i32, %arg1: i32) -> (i32, i32) {
    %c0_i32 = arith.constant 0 : i32
    %c0_i32_0 = arith.constant 0 : i32
    %c0_i32_1 = arith.constant 0 : i32
    return %c0_i32, %c0_i32_0 : i32, i32
  }
  func.func @transform_8(%arg0: i32, %arg1: i32) -> (i32, i32) {
    %c0_i32 = arith.constant 0 : i32
    %c0_i32_0 = arith.constant 0 : i32
    %c0_i32_1 = arith.constant 0 : i32
    return %c0_i32, %c0_i32_0 : i32, i32
  }
  func.func @transform_9(%arg0: i32, %arg1: i32) -> (i32, i32) {
    %c0_i32 = arith.constant 0 : i32
    %c0_i32_0 = arith.constant 0 : i32
    %c0_i32_1 = arith.constant 0 : i32
    return %c0_i32, %c0_i32_0 : i32, i32
  }
  func.func @transform_10(%arg0: i32, %arg1: i32) -> (i32, i32, i32) {
    %c0_i32 = arith.constant 0 : i32
    %c0_i32_0 = arith.constant 0 : i32
    return %arg0, %arg1, %c0_i32 : i32, i32, i32
  }
}

</mosaic_0001>

<bundles_post_ra>
// kernel: deform_network_forward.1
= control target key start
LH: loop header
LB: loop body
LE: loop exit
PB: predicated region body
PF: predicated region fallthrough
CT: control target
= control target key end

     0   :  { %s4048_s13 = smov 0   ;;  %s4050_s14 = smov 0   ;;  %s5218_s0 = inlined_call_operand.vmem [shape: f32[2,256,32], index: 0, kind: input, shape index: {}]   ;;  %s5219_s1 = inlined_call_operand.vmem [shape: bf16[2,32,4], index: 1, kind: input, shape index: {}]   ;;  %s5220_s2 = inlined_call_operand.vmem [shape: bf16[2,4,32], index: 2, kind: input, shape index: {}]   ;;  %s5221_s3 = inlined_call_operand.vmem [shape: bf16[32,32], index: 3, kind: input, shape index: {}]   ;;  %s5222_s4 = inlined_call_operand.vmem [shape: f32[1,32], index: 4, kind: input, shape index: {}]   ;;  %s5223_s5 = inlined_call_operand.vmem [shape: bf16[32,320], index: 5, kind: input, shape index: {}]   ;;  %s5224_s6 = inlined_call_operand.vmem [shape: f32[1,320], index: 6, kind: input, shape index: {}]   ;;  %s5225_s7 = inlined_call_operand.vmem [shape: bf16[320,64], index: 7, kind: input, shape index: {}]   ;;  %s5226_s8 = inlined_call_operand.vmem [shape: f32[1,64], index: 8, kind: input, shape index: {}]   ;;  %s5227_s9 = inlined_call_operand.vmem [shape: f32[4,64], index: 9, kind: input, shape index: {}]   ;;  %s5228_s10 = inlined_call_operand.vmem [shape: f32[2,256,64], index: 10, kind: output, shape index: {}]  }
   0x1   :  { %s4052_s15 = smov 0  }
   0x2 LB: > { %s32_s16 = sadd.s32 1, %s3986_s14  ;;  %p3140_p0 = scmp.ge.s32.totalorder %s3990_s15, 1  ;;  %s3990_s15 = sphi %s4052_s15, %s20_s15   ;;  %s3986_s14 = sphi %s4050_s14, %s5301_s14   ;;  %s3982_s13 = sphi %s4048_s13, %s5300_s13  }
   0x3   : > { %p34_p1 = scmp.ge.s32.totalorder %s32_s16, 2  ;;  %p352_p2 = scmp.lt.s32.totalorder %s3990_s15, 3 }
   0x5   : > { %s5303_s16 = smov (%p34_p1, %s32_s16), 0  ;;  %p353_p3 = pnand %p3140_p0, %p352_p2 }
   0x7   : > { %356 = sbr.rel (%p353_p3) target bundleno = 1339 (0x53b), region = 60 }
   0xc   : > { %v3808_v0 = vld [vmem:[%s5221_s3 + $0x8] sm:$0xff]   ;;  %p408_p4 = scmp.lt.s32.totalorder %s3982_s13, 1  ;;  %v3809_v1 = vld [vmem:[%s5221_s3] sm:$0xff]   ;;  %vm508_vm0 = vcmask 261120   ;;  %vm1281_vm1 = vcmask 1041408   ;;  %vm1055_vm2 = vcmask 31744  }
   0xd   : > { %3550 = vmatprep.subr.bf16.mxu0 %v3808_v0  ;;  %v4137_v55 = vld [vmem:[%s5222_s4] ss:$0 sm:$0xff]  ;;  %vm2732_vm3 = vcmask 1043456   ;;  %vm2264_vm4 = vcmask 523264  }
   0xe   : > { %s5305_s13 = smov (!%p408_p4, %s3982_s13), 1  ;;  %3551 = vmatpush3.bf16.msra.mxu0 %v3808_v0 }
   0xf   : > { %3552 = vmatprep.subr.bf16.mxu0 %v3809_v1  ;;  %s3311_s21 = sshll.u32 %s5305_s13, 8  ;;  %s3312_s25 = sshll.u32 %s5305_s13, 4 }
  0x10   : > { %s4080_s24 = scalar_lea.vmem %s5218_s0, %s3311_s21  ;;  %s421_s28 = scalar_lea.vmem %s5219_s1, %s3312_s25 }
  0x11   : > { %v437_v2 = vld [vmem:[%s4080_s24] sm:$0xff]  ;;  %v438_v3 = vld [vmem:[%s4080_s24 + $0x8] sm:$0xff]  ;;  %v439_v4 = vld [vmem:[%s4080_s24 + $0x10] sm:$0xff]  ;;  %s3145_s11 = sshll.u32 %s5305_s13, 1  ;;  %s5040_s19 = scalar_lea.vmem %s5228_s10, %s3311_s21 }
  0x12   : > { %3553 = vmatpush3.bf16.msra.mxu0 %v3809_v1  ;;  %v469_v5 = vpack.c.bf16 %v438_v3, %v437_v2  ;;  %v440_v6 = vld [vmem:[%s4080_s24 + $0x18] sm:$0xff]  ;;  %v441_v7 = vld [vmem:[%s4080_s24 + $0x20] sm:$0xff]  ;;  %v442_v8 = vld [vmem:[%s4080_s24 + $0x28] sm:$0xff]  ;;  %s425_s18 = scalar_lea.vmem %s5220_s2, %s3145_s11 }
  0x13   : > { %v470_v9 = vpack.c.bf16 %v440_v6, %v439_v4  ;;  %v471_v10 = vpack.c.bf16 %v442_v8, %v441_v7  ;;  %v443_v11 = vld [vmem:[%s4080_s24 + $0x30] sm:$0xff]  ;;  %v444_v12 = vld [vmem:[%s4080_s24 + $0x38] sm:$0xff]  ;;  %v445_v13 = vld [vmem:[%s4080_s24 + $0x40] sm:$0xff] }
  0x14   : > { %3554 = vmatprep.mubr.msk.bf16.mxu0 %vm508_vm0, %v469_v5  ;;  %v446_v14 = vld [vmem:[%s4080_s24 + $0x48] sm:$0xff]  ;;  %v472_v15 = vpack.c.bf16 %v444_v12, %v443_v11  ;;  %v447_v17 = vld [vmem:[%s4080_s24 + $0x50] sm:$0xff]  ;;  %v448_v18 = vld [vmem:[%s4080_s24 + $0x58] sm:$0xff] }
  0x15   : > { %3555 = vmatmul.mubr.msk.bf16.vlgmr.msra.gmra.mxu0 %vm508_vm0, %v470_v9  ;;  %v473_v16 = vpack.c.bf16 %v446_v14, %v445_v13  ;;  %v449_v19 = vld [vmem:[%s4080_s24 + $0x60] sm:$0xff]  ;;  %v450_v20 = vld [vmem:[%s4080_s24 + $0x68] sm:$0xff]  ;;  %v474_v21 = vpack.c.bf16 %v448_v18, %v447_v17  ;;  %v451_v23 = vld [vmem:[%s4080_s24 + $0x70] sm:$0xff] }
  0x16   : > { %3558 = vmatprep.mubr.msk.bf16.mxu0 %vm508_vm0, %v471_v10  ;;  %v475_v22 = vpack.c.bf16 %v450_v20, %v449_v19  ;;  %v452_v24 = vld [vmem:[%s4080_s24 + $0x78] sm:$0xff]  ;;  %v453_v25 = vld [vmem:[%s4080_s24 + $0x80] sm:$0xff]  ;;  %v454_v26 = vld [vmem:[%s4080_s24 + $0x88] sm:$0xff] }
  0x17   : > { %v476_v27 = vpack.c.bf16 %v452_v24, %v451_v23  ;;  %v477_v28 = vpack.c.bf16 %v454_v26, %v453_v25  ;;  %v455_v29 = vld [vmem:[%s4080_s24 + $0x90] sm:$0xff]  ;;  %v456_v30 = vld [vmem:[%s4080_s24 + $0x98] sm:$0xff]  ;;  %v457_v31 = vld [vmem:[%s4080_s24 + $0xa0] sm:$0xff] }
  0x18   : > { %v458_v32 = vld [vmem:[%s4080_s24 + $0xa8] sm:$0xff]  ;;  %v478_v33 = vpack.c.bf16 %v456_v30, %v455_v29  ;;  %v459_v35 = vld [vmem:[%s4080_s24 + $0xb0] sm:$0xff]  ;;  %v460_v36 = vld [vmem:[%s4080_s24 + $0xb8] sm:$0xff] }
  0x19   : > { %v479_v34 = vpack.c.bf16 %v458_v32, %v457_v31  ;;  %v461_v37 = vld [vmem:[%s4080_s24 + $0xc0] sm:$0xff]  ;;  %v462_v38 = vld [vmem:[%s4080_s24 + $0xc8] sm:$0xff]  ;;  %v480_v39 = vpack.c.bf16 %v460_v36, %v459_v35  ;;  %v463_v41 = vld [vmem:[%s4080_s24 + $0xd0] sm:$0xff] }
  0x1a   : > { %v481_v40 = vpack.c.bf16 %v462_v38, %v461_v37  ;;  %v464_v42 = vld [vmem:[%s4080_s24 + $0xd8] sm:$0xff]  ;;  %v465_v43 = vld [vmem:[%s4080_s24 + $0xe0] sm:$0xff]  ;;  %v466_v44 = vld [vmem:[%s4080_s24 + $0xe8] sm:$0xff] }
  0x1b   : > { %v482_v45 = vpack.c.bf16 %v464_v42, %v463_v41  ;;  %v483_v46 = vpack.c.bf16 %v466_v44, %v465_v43  ;;  %v467_v47 = vld [vmem:[%s4080_s24 + $0xf0] sm:$0xff]  ;;  %v468_v48 = vld [vmem:[%s4080_s24 + $0xf8] sm:$0xff]  ;;  %v3810_v50 = vld [vmem:[%s421_s28 + $0x8] sm:$0xff]  }
  0x1c   : > { %v484_v49 = vpack.c.bf16 %v468_v48, %v467_v47  ;;  %3586 = vmatprep.subr.bf16.mxu1 %v3810_v50  ;;  %v3811_v51 = vld [vmem:[%s421_s28] sm:$0xff]  }
  0x1d   : > { %3559 = vmatmul.mubr.msk.bf16.gmra.mxu0 %vm508_vm0, %v472_v15  ;;  %3587 = vmatpush3.bf16.msra.mxu1 %v3810_v50 }
  0x1e   : > { %3562 = vmatprep.mubr.msk.bf16.mxu0 %vm508_vm0, %v473_v16  ;;  %3588 = vmatprep.subr.bf16.mxu1 %v3811_v51 }
  0x21   : > { %3589 = vmatpush3.bf16.msra.mxu1 %v3811_v51 }
  0x25   : > { %3563 = vmatmul.mubr.msk.bf16.gmra.mxu0 %vm508_vm0, %v474_v21 }
  0x26   : > { %3566 = vmatprep.mubr.msk.bf16.mxu0 %vm508_vm0, %v475_v22 }
  0x2d   : > { %3567 = vmatmul.mubr.msk.bf16.gmra.mxu0 %vm508_vm0, %v476_v27 }
  0x2e   : > { %3570 = vmatprep.mubr.msk.bf16.mxu0 %vm508_vm0, %v477_v28 }
  0x35   : > { %3571 = vmatmul.mubr.msk.bf16.gmra.mxu0 %vm508_vm0, %v478_v33 }
  0x36   : > { %3574 = vmatprep.mubr.msk.bf16.mxu0 %vm508_vm0, %v479_v34 }
  0x3d   : > { %3575 = vmatmul.mubr.msk.bf16.gmra.mxu0 %vm508_vm0, %v480_v39 }
  0x3e   : > { %3578 = vmatprep.mubr.msk.bf16.mxu0 %vm508_vm0, %v481_v40 }
  0x45   : > { %3579 = vmatmul.mubr.msk.bf16.gmra.mxu0 %vm508_vm0, %v482_v45 }
  0x46   : > { %3582 = vmatprep.mubr.msk.bf16.mxu0 %vm508_vm0, %v483_v46 }
  0x4d   : > { %3583 = vmatmul.mubr.msk.bf16.gmra.mxu0 %vm508_vm0, %v484_v49 }
  0xd5   : > { %v3556_v52 = vpop.f32.mrf.mxu0 }
  0xd6   : > { %v4149_v60 = vadd.f32 %v3556_v52, %v4137_v55 }
  0xd7   : > { %v591_v53 = vpop.f32.mrf.mxu0 }
  0xd8   : > { %v4143_v58 = vadd.f32 %v4137_v55, %v591_v53 }
  0xd9   : > { %v3557_v54 = vpop.f32.mrf.mxu0 }
  0xda   : > { %v4140_v56 = vadd.f32 %v3557_v54, %v4137_v55 }
  0xdb   : > { %v594_v57 = vpop.f32.mrf.mxu0 }
  0xdc   : > { %v4146_v59 = vadd.f32 %v4137_v55, %v594_v57  ;;  %v719_v63 = vpack.c.bf16 %v4140_v56, %v4149_v60 }
  0xdd   : > { %v3560_v61 = vpop.f32.mrf.mxu0 }
  0xde   : > { %v718_v62 = vpack.c.bf16 %v4146_v59, %v4143_v58  ;;  %v4167_v6 = vadd.f32 %v3560_v61, %v4137_v55 }
  0xdf   : > { %v607_v0 = vpop.f32.mrf.mxu0 }
  0xe0   : > { %3590 = vmatprep.mubr.msk.bf16.mxu1 %vm508_vm0, %v718_v62  ;;  %v4161_v4 = vadd.f32 %v4137_v55, %v607_v0 }
  0xe1   : > { %v3561_v1 = vpop.f32.mrf.mxu0  ;;  %3591 = vmatmul.mubr.msk.bf16.vlgmr.msra.gmra.mxu1 %vm508_vm0, %v719_v63 }
  0xe2   : > { %v4158_v2 = vadd.f32 %v3561_v1, %v4137_v55 }
  0xe3   : > { %v610_v3 = vpop.f32.mrf.mxu0 }
  0xe4   : > { %v4164_v5 = vadd.f32 %v4137_v55, %v610_v3  ;;  %v721_v9 = vpack.c.bf16 %v4158_v2, %v4167_v6 }
  0xe5   : > { %v3564_v7 = vpop.f32.mrf.mxu0 }
  0xe6   : > { %v720_v8 = vpack.c.bf16 %v4164_v5, %v4161_v4  ;;  %v4185_v16 = vadd.f32 %v3564_v7, %v4137_v55 }
  0xe7   : > { %v623_v10 = vpop.f32.mrf.mxu0 }
  0xe8   : > { %3594 = vmatprep.mubr.msk.bf16.mxu1 %vm508_vm0, %v720_v8  ;;  %v4179_v14 = vadd.f32 %v4137_v55, %v623_v10 }
  0xe9   : > { %v3565_v11 = vpop.f32.mrf.mxu0  ;;  %3595 = vmatmul.mubr.msk.bf16.gmra.mxu1 %vm508_vm0, %v721_v9 }
  0xea   : > { %v4176_v12 = vadd.f32 %v3565_v11, %v4137_v55 }
  0xeb   : > { %v626_v13 = vpop.f32.mrf.mxu0 }
  0xec   : > { %v4182_v15 = vadd.f32 %v4137_v55, %v626_v13  ;;  %v723_v19 = vpack.c.bf16 %v4176_v12, %v4185_v16 }
  0xed   : > { %v3568_v17 = vpop.f32.mrf.mxu0 }
  0xee   : > { %v722_v18 = vpack.c.bf16 %v4182_v15, %v4179_v14  ;;  %v4203_v26 = vadd.f32 %v3568_v17, %v4137_v55 }
  0xef   : > { %v639_v20 = vpop.f32.mrf.mxu0 }
  0xf0   : > { %3598 = vmatprep.mubr.msk.bf16.mxu1 %vm508_vm0, %v722_v18  ;;  %v4197_v24 = vadd.f32 %v4137_v55, %v639_v20  ;;  %v1232_v18 = vld [vmem:[%s425_s18] sm:$0x3] }
  0xf1   : > { %v3569_v21 = vpop.f32.mrf.mxu0  ;;  %3599 = vmatmul.mubr.msk.bf16.gmra.mxu1 %vm508_vm0, %v723_v19  ;;  %3782 = vmatprep.subr.msk.bf16.mxu0 %vm1281_vm1, %v1232_v18 }
  0xf2   : > { %v4194_v22 = vadd.f32 %v3569_v21, %v4137_v55 }
  0xf3   : > { %v642_v23 = vpop.f32.mrf.mxu0 }
  0xf4   : > { %v4200_v25 = vadd.f32 %v4137_v55, %v642_v23  ;;  %v725_v29 = vpack.c.bf16 %v4194_v22, %v4203_v26 }
  0xf5   : > { %v3572_v27 = vpop.f32.mrf.mxu0 }
  0xf6   : > { %v724_v28 = vpack.c.bf16 %v4200_v25, %v4197_v24  ;;  %v4221_v36 = vadd.f32 %v3572_v27, %v4137_v55 }
  0xf7   : > { %v655_v30 = vpop.f32.mrf.mxu0 }
  0xf8   : > { %3602 = vmatprep.mubr.msk.bf16.mxu1 %vm508_vm0, %v724_v28  ;;  %v4215_v34 = vadd.f32 %v4137_v55, %v655_v30  ;;  %5248 = vst [vmem:[#allocation3_spill] sm:$0xff] %v4221_v36 }
  0xf9   : > { %v3573_v31 = vpop.f32.mrf.mxu0  ;;  %3603 = vmatmul.mubr.msk.bf16.gmra.mxu1 %vm508_vm0, %v725_v29 }
  0xfa   : > { %v4212_v32 = vadd.f32 %v3573_v31, %v4137_v55 }
  0xfb   : > { %v658_v33 = vpop.f32.mrf.mxu0 }
  0xfc   : > { %v4218_v35 = vadd.f32 %v4137_v55, %v658_v33  ;;  %v727_v39 = vpack.c.bf16 %v4212_v32, %v4221_v36 }
  0xfd   : > { %v3576_v37 = vpop.f32.mrf.mxu0 }
  0xfe   : > { %5247 = vst [vmem:[#allocation2_spill] sm:$0xff] %v4218_v35  ;;  %v726_v38 = vpack.c.bf16 %v4218_v35, %v4215_v34  ;;  %v4239_v46 = vadd.f32 %v3576_v37, %v4137_v55 }
  0xff   : > { %v671_v40 = vpop.f32.mrf.mxu0 }
 0x100   : > { %3606 = vmatprep.mubr.msk.bf16.mxu1 %vm508_vm0, %v726_v38  ;;  %v4233_v44 = vadd.f32 %v4137_v55, %v671_v40  ;;  %5252 = vst [vmem:[#allocation7_spill] sm:$0xff] %v4239_v46 }
 0x101   : > { %v3577_v41 = vpop.f32.mrf.mxu0  ;;  %3607 = vmatmul.mubr.msk.bf16.gmra.mxu1 %vm508_vm0, %v727_v39 }
 0x102   : > { %v4230_v42 = vadd.f32 %v3577_v41, %v4137_v55  ;;  %5250 = vst [vmem:[#allocation5_spill] sm:$0xff] %v4233_v44 }
 0x103   : > { %v674_v43 = vpop.f32.mrf.mxu0 }
 0x104   : > { %5249 = vst [vmem:[#allocation4_spill] sm:$0xff] %v4230_v42  ;;  %v4236_v45 = vadd.f32 %v4137_v55, %v674_v43  ;;  %v729_v49 = vpack.c.bf16 %v4230_v42, %v4239_v46 }
 0x105   : > { %v3580_v47 = vpop.f32.mrf.mxu0 }
 0x106   : > { %5251 = vst [vmem:[#allocation6_spill] sm:$0xff] %v4236_v45  ;;  %v728_v48 = vpack.c.bf16 %v4236_v45, %v4233_v44  ;;  %v4257_v61 = vadd.f32 %v3580_v47, %v4137_v55 }
 0x107   : > { %v687_v50 = vpop.f32.mrf.mxu0 }
 0x108   : > { %3610 = vmatprep.mubr.msk.bf16.mxu1 %vm508_vm0, %v728_v48  ;;  %v4251_v54 = vadd.f32 %v4137_v55, %v687_v50  ;;  %5256 = vst [vmem:[#allocation11_spill] sm:$0xff] %v4257_v61 }
 0x109   : > { %v3581_v51 = vpop.f32.mrf.mxu0  ;;  %3611 = vmatmul.mubr.msk.bf16.gmra.mxu1 %vm508_vm0, %v729_v49 }
 0x10a   : > { %v4248_v52 = vadd.f32 %v3581_v51, %v4137_v55  ;;  %5254 = vst [vmem:[#allocation9_spill] sm:$0xff] %v4251_v54 }
 0x10b   : > { %v690_v53 = vpop.f32.mrf.mxu0 }
 0x10c   : > { %5253 = vst [vmem:[#allocation8_spill] sm:$0xff] %v4248_v52  ;;  %v4254_v57 = vadd.f32 %v4137_v55, %v690_v53  ;;  %v731_v0 = vpack.c.bf16 %v4248_v52, %v4257_v61  ;;  %v3815_v61 = vld [vmem:[%s5223_s5 + $0x20] ss:$12 sps:$4 sm:$0xff]  }
 0x10d   : > { %v3584_v62 = vpop.f32.mrf.mxu0 }
 0x10e   : > { %5255 = vst [vmem:[#allocation10_spill] sm:$0xff] %v4254_v57  ;;  %v730_v63 = vpack.c.bf16 %v4254_v57, %v4251_v54  ;;  %v4275_v11 = vadd.f32 %v3584_v62, %v4137_v55 }
 0x10f   : > { %v703_v1 = vpop.f32.mrf.mxu0 }
 0x110   : > { %3614 = vmatprep.mubr.msk.bf16.mxu1 %vm508_vm0, %v730_v63  ;;  %v4269_v9 = vadd.f32 %v4137_v55, %v703_v1  ;;  %5260 = vst [vmem:[#allocation15_spill] sm:$0xff] %v4275_v11 }
 0x111   : > { %v3585_v3 = vpop.f32.mrf.mxu0  ;;  %3615 = vmatmul.mubr.msk.bf16.gmra.mxu1 %vm508_vm0, %v731_v0 }
 0x112   : > { %v4266_v7 = vadd.f32 %v3585_v3, %v4137_v55  ;;  %5258 = vst [vmem:[#allocation13_spill] sm:$0xff] %v4269_v9 }
 0x113   : > { %v706_v8 = vpop.f32.mrf.mxu0 }
 0x114   : > { %5257 = vst [vmem:[#allocation12_spill] sm:$0xff] %v4266_v7  ;;  %v4272_v10 = vadd.f32 %v4137_v55, %v706_v8  ;;  %v733_v17 = vpack.c.bf16 %v4266_v7, %v4275_v11  ;;  %v1283_v55 = vsel %vm1281_vm1, %v1232_v18, 0 }
 0x115   : > { %3623 = vmatpush3.bf16.msra.mxu0 %v1283_v55 }
 0x116   : > { %5259 = vst [vmem:[#allocation14_spill] sm:$0xff] %v4272_v10  ;;  %v732_v13 = vpack.c.bf16 %v4272_v10, %v4269_v9  ;;  %3656 = vmatprep.subr.bf16.mxu0 %v3815_v61 }
 0x118   : > { %3618 = vmatprep.mubr.msk.bf16.mxu1 %vm508_vm0, %v732_v13 }
 0x119   : > { %3619 = vmatmul.mubr.msk.bf16.gmra.mxu1 %vm508_vm0, %v733_v17 }
 0x1a1   : > { %v3592_v19 = vpop.f32.mrf.mxu1 }
 0x1a2   : > { %v961_v20 = vmul.f32 0.17677669, %v3592_v19 }
 0x1a3   : > { %v832_v21 = vpop.f32.mrf.mxu1 }
 0x1a4   : > { %v995_v23 = vmul.f32 1.442695, %v961_v20  ;;  %v959_v27 = vmul.f32 0.17677669, %v832_v21 }
 0x1a5   : > { %v3593_v28 = vpop.f32.mrf.mxu1 }
 0x1a6   : > { %3840 = vpow2.f32 %v995_v23  ;;  %v991_v29 = vmul.f32 1.442695, %v959_v27  ;;  %v962_v30 = vmul.f32 0.17677669, %v3593_v28 }
 0x1a7   : > { %v835_v31 = vpop.f32.mrf.mxu1 }
 0x1a8   : > { %3842 = vpow2.f32 %v991_v29  ;;  %v997_v33 = vmul.f32 1.442695, %v962_v30  ;;  %v960_v37 = vmul.f32 0.17677669, %v835_v31 }
 0x1a9   : > { %v3596_v38 = vpop.f32.mrf.mxu1 }
 0x1aa   : > { %3844 = vpow2.f32 %v997_v33  ;;  %v993_v39 = vmul.f32 1.442695, %v960_v37  ;;  %v965_v40 = vmul.f32 0.17677669, %v3596_v38 }
 0x1ab   : > { %v848_v41 = vpop.f32.mrf.mxu1 }
 0x1ac   : > { %3846 = vpow2.f32 %v993_v39  ;;  %v963_v43 = vmul.f32 0.17677669, %v848_v41  ;;  %v1003_v47 = vmul.f32 1.442695, %v965_v40 }
 0x1ad   : > { %v3597_v48 = vpop.f32.mrf.mxu1 }
 0x1ae   : > { %v999_v49 = vmul.f32 1.442695, %v963_v43  ;;  %v966_v50 = vmul.f32 0.17677669, %v3597_v48 }
 0x1af   : > { %v851_v51 = vpop.f32.mrf.mxu1 }
 0x1b0   : > { %3848 = vpow2.f32 %v999_v49  ;;  %v964_v53 = vmul.f32 0.17677669, %v851_v51  ;;  %v1005_v63 = vmul.f32 1.442695, %v966_v50 }
 0x1b1   : > { %3850 = vpow2.f32 %v1003_v47  ;;  %v3600_v62 = vpop.f32.mrf.mxu1 }
 0x1b2   : > { %v1001_v0 = vmul.f32 1.442695, %v964_v53  ;;  %v969_v1 = vmul.f32 0.17677669, %v3600_v62 }
 0x1b3   : > { %v4287_v3 = vpop.eup %3840  ;;  %v864_v8 = vpop.f32.mrf.mxu1 }
 0x1b4   : > { %3852 = vpow2.f32 %v1001_v0  ;;  %v967_v13 = vmul.f32 0.17677669, %v864_v8  ;;  %v1062_v17 = vsel %vm1055_vm2, %v4287_v3, 0.0  ;;  %v1011_v55 = vmul.f32 1.442695, %v969_v1 }
 0x1b5   : > { %v4291_v18 = vpop.eup %3842  ;;  %1063 = vadd.xlane.f32.xlu1 %v1062_v17  ;;  %v3601_v19 = vpop.f32.mrf.mxu1  ;;  %3854 = vpow2.f32 %v1005_v63 }
 0x1b6   : > { %v1007_v20 = vmul.f32 1.442695, %v967_v13  ;;  %v970_v21 = vmul.f32 0.17677669, %v3601_v19  ;;  %v1056_v23 = vsel %vm1055_vm2, %v4291_v18, 0.0 }
 0x1b7   : > { %v4295_v27 = vpop.eup %3844  ;;  %1057 = vadd.xlane.f32.xlu0 %v1056_v23  ;;  %v867_v28 = vpop.f32.mrf.mxu1 }
 0x1b8   : > { %3856 = vpow2.f32 %v1007_v20  ;;  %v968_v29 = vmul.f32 0.17677669, %v867_v28  ;;  %v1065_v30 = vsel %vm1055_vm2, %v4295_v27, 0.0  ;;  %v1013_v33 = vmul.f32 1.442695, %v970_v21 }
 0x1b9   : > { %v4299_v31 = vpop.eup %3846  ;;  %1066 = vadd.xlane.f32.xlu1 %v1065_v30  ;;  %v3604_v37 = vpop.f32.mrf.mxu1  ;;  %3858 = vpow2.f32 %v1011_v55 }
 0x1ba   : > { %v1009_v38 = vmul.f32 1.442695, %v968_v29  ;;  %v973_v39 = vmul.f32 0.17677669, %v3604_v37  ;;  %v1059_v40 = vsel %vm1055_vm2, %v4299_v31, 0.0 }
 0x1bb   : > { %1060 = vadd.xlane.f32.xlu0 %v1059_v40  ;;  %v880_v41 = vpop.f32.mrf.mxu1 }
 0x1bc   : > { %3860 = vpow2.f32 %v1009_v38  ;;  %v971_v43 = vmul.f32 0.17677669, %v880_v41  ;;  %v1019_v48 = vmul.f32 1.442695, %v973_v39 }
 0x1bd   : > { %v4303_v47 = vpop.eup %3848  ;;  %v3605_v49 = vpop.f32.mrf.mxu1  ;;  %3862 = vpow2.f32 %v1013_v33 }
 0x1be   : > { %v4305_v50 = vpop.eup %3850  ;;  %v1015_v51 = vmul.f32 1.442695, %v971_v43  ;;  %v974_v53 = vmul.f32 0.17677669, %v3605_v49  ;;  %v1068_v62 = vsel %vm1055_vm2, %v4303_v47, 0.0 }
 0x1bf   : > { %1069 = vadd.xlane.f32.xlu0 %v1068_v62  ;;  %v883_v63 = vpop.f32.mrf.mxu1  ;;  %v1074_v17 = vsel %vm1055_vm2, %v4305_v50, 0.0 }
 0x1c0   : > { %3864 = vpow2.f32 %v1015_v51  ;;  %v972_v0 = vmul.f32 0.17677669, %v883_v63  ;;  %v1021_v8 = vmul.f32 1.442695, %v974_v53 }
 0x1c1   : > { %v4309_v1 = vpop.eup %3852  ;;  %v3608_v13 = vpop.f32.mrf.mxu1  ;;  %3866 = vpow2.f32 %v1019_v48 }
 0x1c2   : > { %v1017_v55 = vmul.f32 1.442695, %v972_v0  ;;  %v977_v19 = vmul.f32 0.17677669, %v3608_v13  ;;  %v1071_v20 = vsel %vm1055_vm2, %v4309_v1, 0.0  ;;  %v4315_v21 = vpop.eup %3854 }
 0x1c3   : > { %1075 = vadd.xlane.f32.xlu0 %v1074_v17  ;;  %1072 = vadd.xlane.f32.xlu1 %v1071_v20  ;;  %v896_v23 = vpop.f32.mrf.mxu1  ;;  %v1077_v39 = vsel %vm1055_vm2, %v4315_v21, 0.0 }
 0x1c4   : > { %3868 = vpow2.f32 %v1017_v55  ;;  %v975_v28 = vmul.f32 0.17677669, %v896_v23  ;;  %v1027_v30 = vmul.f32 1.442695, %v977_v19 }
 0x1c5   : > { %v4317_v29 = vpop.eup %3856  ;;  %3870 = vpow2.f32 %v1021_v8  ;;  %v3609_v33 = vpop.f32.mrf.mxu1 }
 0x1c6   : > { %v1023_v37 = vmul.f32 1.442695, %v975_v28  ;;  %v978_v38 = vmul.f32 0.17677669, %v3609_v33  ;;  %v1080_v40 = vsel %vm1055_vm2, %v4317_v29, 0.0  ;;  %v4323_v41 = vpop.eup %3858 }
 0x1c7   : > { %1078 = vadd.xlane.f32.xlu1 %v1077_v39  ;;  %1081 = vadd.xlane.f32.xlu0 %v1080_v40  ;;  %v899_v43 = vpop.f32.mrf.mxu1  ;;  %v1086_v0 = vsel %vm1055_vm2, %v4323_v41, 0.0 }
 0x1c8   : > { %3872 = vpow2.f32 %v1023_v37  ;;  %v976_v48 = vmul.f32 0.17677669, %v899_v43  ;;  %v1029_v51 = vmul.f32 1.442695, %v978_v38 }
 0x1c9   : > { %v4325_v49 = vpop.eup %3860  ;;  %3874 = vpow2.f32 %v1027_v30  ;;  %v3612_v53 = vpop.f32.mrf.mxu1 }
 0x1ca   : > { %v1025_v62 = vmul.f32 1.442695, %v976_v48  ;;  %v981_v63 = vmul.f32 0.17677669, %v3612_v53  ;;  %v1083_v8 = vsel %vm1055_vm2, %v4325_v49, 0.0  ;;  %v4331_v13 = vpop.eup %3862 }
 0x1cb   : > { %1087 = vadd.xlane.f32.xlu0 %v1086_v0  ;;  %1084 = vadd.xlane.f32.xlu1 %v1083_v8  ;;  %v912_v17 = vpop.f32.mrf.mxu1  ;;  %v1089_v33 = vsel %vm1055_vm2, %v4331_v13, 0.0 }
 0x1cc   : > { %3876 = vpow2.f32 %v1025_v62  ;;  %v979_v55 = vmul.f32 0.17677669, %v912_v17  ;;  %v1035_v20 = vmul.f32 1.442695, %v981_v63 }
 0x1cd   : > { %v4333_v19 = vpop.eup %3864  ;;  %3878 = vpow2.f32 %v1029_v51  ;;  %v3613_v23 = vpop.f32.mrf.mxu1 }
 0x1ce   : > { %v1031_v28 = vmul.f32 1.442695, %v979_v55  ;;  %v982_v30 = vmul.f32 0.17677669, %v3613_v23  ;;  %v1092_v37 = vsel %vm1055_vm2, %v4333_v19, 0.0  ;;  %v4339_v38 = vpop.eup %3866 }
 0x1cf   : > { %1090 = vadd.xlane.f32.xlu1 %v1089_v33  ;;  %1093 = vadd.xlane.f32.xlu0 %v1092_v37  ;;  %v915_v39 = vpop.f32.mrf.mxu1  ;;  %v1098_v0 = vsel %vm1055_vm2, %v4339_v38, 0.0 }
 0x1d0   : > { %3880 = vpow2.f32 %v1031_v28  ;;  %v980_v40 = vmul.f32 0.17677669, %v915_v39  ;;  %v1037_v48 = vmul.f32 1.442695, %v982_v30 }
 0x1d1   : > { %v4341_v43 = vpop.eup %3868  ;;  %3882 = vpow2.f32 %v1035_v20  ;;  %v3616_v51 = vpop.f32.mrf.mxu1 }
 0x1d2   : > { %v4343_v53 = vpop.eup %3870  ;;  %v1033_v62 = vmul.f32 1.442695, %v980_v40  ;;  %v985_v63 = vmul.f32 0.17677669, %v3616_v51  ;;  %v1095_v8 = vsel %vm1055_vm2, %v4341_v43, 0.0 }
 0x1d3   : > { %1099 = vadd.xlane.f32.xlu0 %v1098_v0  ;;  %1096 = vadd.xlane.f32.xlu1 %v1095_v8  ;;  %v928_v17 = vpop.f32.mrf.mxu1  ;;  %v1101_v30 = vsel %vm1055_vm2, %v4343_v53, 0.0 }
 0x1d4   : > { %3884 = vpow2.f32 %v1033_v62  ;;  %v983_v55 = vmul.f32 0.17677669, %v928_v17  ;;  %v1043_v20 = vmul.f32 1.442695, %v985_v63 }
 0x1d5   : > { %v4349_v23 = vpop.eup %3872  ;;  %v3617_v28 = vpop.f32.mrf.mxu1  ;;  %3886 = vpow2.f32 %v1037_v48 }
 0x1d6   : > { %v4353_v33 = vpop.eup %3874  ;;  %v1039_v37 = vmul.f32 1.442695, %v983_v55  ;;  %v986_v39 = vmul.f32 0.17677669, %v3617_v28  ;;  %v1104_v40 = vsel %vm1055_vm2, %v4349_v23, 0.0 }
 0x1d7   : > { %1102 = vadd.xlane.f32.xlu1 %v1101_v30  ;;  %1105 = vadd.xlane.f32.xlu0 %v1104_v40  ;;  %v931_v51 = vpop.f32.mrf.mxu1  ;;  %v1110_v17 = vsel %vm1055_vm2, %v4353_v33, 0.0 }
 0x1d8   : > { %3888 = vpow2.f32 %v1039_v37  ;;  %v984_v62 = vmul.f32 0.17677669, %v931_v51  ;;  %v1045_v63 = vmul.f32 1.442695, %v986_v39 }
 0x1d9   : > { %v4357_v0 = vpop.eup %3876  ;;  %v3620_v8 = vpop.f32.mrf.mxu1  ;;  %3890 = vpow2.f32 %v1043_v20 }
 0x1da   : > { %v4361_v10 = vpop.eup %3878  ;;  %v1041_v48 = vmul.f32 1.442695, %v984_v62  ;;  %v989_v55 = vmul.f32 0.17677669, %v3620_v8  ;;  %v1107_v28 = vsel %vm1055_vm2, %v4357_v0, 0.0 }
 0x1db   : > { %1111 = vadd.xlane.f32.xlu0 %v1110_v17  ;;  %1108 = vadd.xlane.f32.xlu1 %v1107_v28  ;;  %v944_v30 = vpop.f32.mrf.mxu1  ;;  %v1113_v11 = vsel %vm1055_vm2, %v4361_v10, 0.0 }
 0x1dc   : > { %3892 = vpow2.f32 %v1041_v48  ;;  %v987_v37 = vmul.f32 0.17677669, %v944_v30  ;;  %v1051_v39 = vmul.f32 1.442695, %v989_v55 }
 0x1dd   : > { %v4365_v40 = vpop.eup %3880  ;;  %v3621_v51 = vpop.f32.mrf.mxu1  ;;  %3894 = vpow2.f32 %v1045_v63 }
 0x1de   : > { %v4369_v7 = vpop.eup %3882  ;;  %v1047_v20 = vmul.f32 1.442695, %v987_v37  ;;  %v990_v62 = vmul.f32 0.17677669, %v3621_v51  ;;  %v1116_v8 = vsel %vm1055_vm2, %v4365_v40, 0.0 }
 0x1df   : > { %1114 = vadd.xlane.f32.xlu1 %v1113_v11  ;;  %1117 = vadd.xlane.f32.xlu0 %v1116_v8  ;;  %v947_v17 = vpop.f32.mrf.mxu1  ;;  %v1122_v55 = vsel %vm1055_vm2, %v4369_v7, 0.0 }
 0x1e0   : > { %3896 = vpow2.f32 %v1047_v20  ;;  %v988_v48 = vmul.f32 0.17677669, %v947_v17  ;;  %v1053_v30 = vmul.f32 1.442695, %v990_v62 }
 0x1e1   : > { %v4373_v28 = vpop.eup %3884  ;;  %3898 = vpow2.f32 %v1051_v39 }
 0x1e2   : > { %v1049_v9 = vmul.f32 1.442695, %v988_v48  ;;  %v1119_v63 = vsel %vm1055_vm2, %v4373_v28, 0.0  ;;  %v4379_v37 = vpop.eup %3886 }
 0x1e3   : > { %1123 = vadd.xlane.f32.xlu0 %v1122_v55  ;;  %1120 = vadd.xlane.f32.xlu1 %v1119_v63  ;;  %v1125_v51 = vsel %vm1055_vm2, %v4379_v37, 0.0 }
 0x1e4   : > { %3900 = vpow2.f32 %v1049_v9 }
 0x1e5   : > { %v4381_v11 = vpop.eup %3888  ;;  %3902 = vpow2.f32 %v1053_v30 }
 0x1e6   : > { %v1128_v20 = vsel %vm1055_vm2, %v4381_v11, 0.0  ;;  %v4387_v39 = vpop.eup %3890 }
 0x1e7   : > { %1126 = vadd.xlane.f32.xlu1 %v1125_v51  ;;  %1129 = vadd.xlane.f32.xlu0 %v1128_v20  ;;  %v1134_v8 = vsel %vm1055_vm2, %v4387_v39, 0.0 }
 0x1e9   : > { %v4389_v62 = vpop.eup %3892 }
 0x1ea   : > { %v1131_v9 = vsel %vm1055_vm2, %v4389_v62, 0.0  ;;  %v4395_v17 = vpop.eup %3894 }
 0x1eb   : > { %1135 = vadd.xlane.f32.xlu0 %v1134_v8  ;;  %1132 = vadd.xlane.f32.xlu1 %v1131_v9  ;;  %v1137_v55 = vsel %vm1055_vm2, %v4395_v17, 0.0 }
 0x1ed   : > { %v4397_v48 = vpop.eup %3896 }
 0x1ee   : > { %v1140_v30 = vsel %vm1055_vm2, %v4397_v48, 0.0  ;;  %v4403_v63 = vpop.eup %3898 }
 0x1ef   : > { %1138 = vadd.xlane.f32.xlu1 %v1137_v55  ;;  %1141 = vadd.xlane.f32.xlu0 %v1140_v30  ;;  %v1146_v20 = vsel %vm1055_vm2, %v4403_v63, 0.0  ;;  %v3812_v55 = vld [vmem:[%s5223_s5 + $0x18] ss:$12 sps:$4 sm:$0xff]   ;;  %v3814_v30 = vld [vmem:[%s5223_s5 + $0x1c] ss:$12 sps:$4 sm:$0xff]  }
 0x1f0   : > { %1611 = vmatprep.subr.bf16.mxu1 %v3814_v30 }
 0x1f1   : > { %v4405_v51 = vpop.eup %3900  ;;  %1612 = vmatpush1.bf16.msra.mxu1 %v3812_v55 }
 0x1f2   : > { %v1143_v8 = vsel %vm1055_vm2, %v4405_v51, 0.0  ;;  %v4411_v9 = vpop.eup %3902 }
 0x1f3   : > { %1147 = vadd.xlane.f32.xlu0 %v1146_v20  ;;  %1144 = vadd.xlane.f32.xlu1 %v1143_v8  ;;  %v1149_v57 = vsel %vm1055_vm2, %v4411_v9, 0.0  ;;  %v3818_v20 = vld [vmem:[%s5223_s5 + $0x4] ss:$12 sps:$4 sm:$0xff]  }
 0x1f4   : > { %1613 = vmatprep.subr.bf16.mxu1 %v3818_v20 }
 0x1f7   : > { %1150 = vadd.xlane.f32.xlu1 %v1149_v57  ;;  %v3816_v57 = vld [vmem:[%s5223_s5] ss:$12 sps:$4 sm:$0xff]  }
 0x1f8   : > { %1614 = vmatpush1.bf16.msra.mxu1 %v3816_v57 }
 0x23e   : > { %v1064_v8 = vpop.xlane.xlu1 %1063 }
 0x240   : > { %v1058_v52 = vpop.xlane.xlu0 %1057 }
 0x241   : > { %3904 = vrcp.f32 %v1058_v52 }
 0x242   : > { %v1067_v54 = vpop.xlane.xlu1 %1066 }
 0x243   : > { %3906 = vrcp.f32 %v1067_v54 }
 0x244   : > { %3908 = vrcp.f32 %v1064_v8  ;;  %v1061_v45 = vpop.xlane.xlu0 %1060 }
 0x245   : > { %3910 = vrcp.f32 %v1061_v45 }
 0x248   : > { %v1070_v46 = vpop.xlane.xlu0 %1069 }
 0x249   : > { %3912 = vrcp.f32 %v1070_v46 }
 0x24c   : > { %v1076_v42 = vpop.xlane.xlu0 %1075  ;;  %v1073_v30 = vpop.xlane.xlu1 %1072 }
 0x24d   : > { %3914 = vrcp.f32 %v1073_v30 }
 0x24e   : > { %v3905_v55 = vpop.eup %3904  ;;  %3916 = vrcp.f32 %v1076_v42 }
 0x24f   : > { %v4434_v54 = vmul.f32 %v3905_v55, %v4291_v18 }
 0x250   : > { %v3907_v44 = vpop.eup %3906  ;;  %v1079_v35 = vpop.xlane.xlu1 %1078 }
 0x251   : > { %v1082_v36 = vpop.xlane.xlu0 %1081  ;;  %v3909_v20 = vpop.eup %3908  ;;  %3918 = vrcp.f32 %v1079_v35  ;;  %v4431_v52 = vmul.f32 %v3907_v44, %v4295_v27  ;;  %v3819_v44 = vld [vmem:[%s5223_s5 + $0x8] ss:$12 sps:$4 sm:$0xff]  }
 0x252   : > { %v3911_v57 = vpop.eup %3910  ;;  %v4440_v46 = vmul.f32 %v3909_v20, %v4287_v3  ;;  %3920 = vrcp.f32 %v1082_v36 }
 0x253   : > { %v4437_v45 = vmul.f32 %v3911_v57, %v4299_v31 }
 0x254   : > { %v1085_v8 = vpop.xlane.xlu1 %1084  ;;  %v1217_v35 = vpack.c.bf16 %v4431_v52, %v4440_v46 }
 0x255   : > { %v1088_v42 = vpop.xlane.xlu0 %1087  ;;  %v1216_v30 = vpack.c.bf16 %v4437_v45, %v4434_v54  ;;  %3922 = vrcp.f32 %v1085_v8 }
 0x256   : > { %3924 = vrcp.f32 %v1088_v42  ;;  %v3913_v18 = vpop.eup %3912 }
 0x257   : > { %3624 = vmatprep.mubr.msk.bf16.mxu0 %vm1055_vm2, %v1216_v30  ;;  %v4452_v57 = vmul.f32 %v3913_v18, %v4303_v47 }
 0x258   : > { %3625 = vmatmul.mubr.msk.bf16.vlgmr.msra.gmra.mxu0 %vm1055_vm2, %v1217_v35  ;;  %v1091_v3 = vpop.xlane.xlu1 %1090 }
 0x259   : > { %v1094_v36 = vpop.xlane.xlu0 %1093  ;;  %3926 = vrcp.f32 %v1091_v3  ;;  %3657 = vmatpush3.bf16.msra.mxu0 %v3815_v61 }
 0x25a   : > { %3658 = vmatprep.subr.bf16.mxu0 %v3819_v44  ;;  %v3915_v27 = vpop.eup %3914  ;;  %3928 = vrcp.f32 %v1094_v36 }
 0x25b   : > { %v3917_v31 = vpop.eup %3916  ;;  %v4455_v42 = vmul.f32 %v3915_v27, %v4309_v1 }
 0x25c   : > { %v1097_v20 = vpop.xlane.xlu1 %1096  ;;  %v4460_v61 = vmul.f32 %v3917_v31, %v4305_v50 }
 0x25d   : > { %v1100_v55 = vpop.xlane.xlu0 %1099  ;;  %3659 = vmatpush3.bf16.msra.mxu0 %v3819_v44  ;;  %3930 = vrcp.f32 %v1097_v20  ;;  %v1218_v30 = vpack.c.bf16 %v4455_v42, %v4452_v57 }
 0x25e   : > { %v3919_v8 = vpop.eup %3918  ;;  %3932 = vrcp.f32 %v1100_v55 }
 0x25f   : > { %v4463_v35 = vmul.f32 %v3919_v8, %v4315_v21  ;;  %3628 = vmatprep.mubr.msk.bf16.mxu0 %vm1055_vm2, %v1218_v30  ;;  %v3921_v36 = vpop.eup %3920 }
 0x260   : > { %v1103_v47 = vpop.xlane.xlu1 %1102  ;;  %v4470_v31 = vmul.f32 %v3921_v36, %v4317_v29 }
 0x261   : > { %v1106_v3 = vpop.xlane.xlu0 %1105  ;;  %3934 = vrcp.f32 %v1103_v47  ;;  %v1219_v1 = vpack.c.bf16 %v4463_v35, %v4460_v61 }
 0x262   : > { %v3923_v44 = vpop.eup %3922  ;;  %3936 = vrcp.f32 %v1106_v3 }
 0x263   : > { %3629 = vmatmul.mubr.msk.bf16.gmra.mxu0 %vm1055_vm2, %v1219_v1  ;;  %v3925_v18 = vpop.eup %3924  ;;  %v4473_v21 = vmul.f32 %v3923_v44, %v4325_v49 }
 0x264   : > { %v1109_v50 = vpop.xlane.xlu1 %1108  ;;  %v4478_v8 = vmul.f32 %v3925_v18, %v4323_v41 }
 0x265   : > { %v1112_v27 = vpop.xlane.xlu0 %1111  ;;  %3938 = vrcp.f32 %v1109_v50  ;;  %v1220_v20 = vpack.c.bf16 %v4473_v21, %v4470_v31 }
 0x266   : > { %v3927_v55 = vpop.eup %3926  ;;  %3940 = vrcp.f32 %v1112_v27 }
 0x267   : > { %v4481_v30 = vmul.f32 %v3927_v55, %v4331_v13  ;;  %3632 = vmatprep.mubr.msk.bf16.mxu0 %vm1055_vm2, %v1220_v20  ;;  %v3929_v3 = vpop.eup %3928 }
 0x268   : > { %v1115_v47 = vpop.xlane.xlu1 %1114  ;;  %v4488_v18 = vmul.f32 %v3929_v3, %v4333_v19 }
 0x269   : > { %v1118_v29 = vpop.xlane.xlu0 %1117  ;;  %3942 = vrcp.f32 %v1115_v47  ;;  %v1221_v49 = vpack.c.bf16 %v4481_v30, %v4478_v8 }
 0x26a   : > { %v3931_v36 = vpop.eup %3930  ;;  %3944 = vrcp.f32 %v1118_v29 }
 0x26b   : > { %3633 = vmatmul.mubr.msk.bf16.gmra.mxu0 %vm1055_vm2, %v1221_v49  ;;  %v3933_v1 = vpop.eup %3932  ;;  %v4491_v13 = vmul.f32 %v3931_v36, %v4341_v43 }
 0x26c   : > { %v1121_v41 = vpop.xlane.xlu1 %1120  ;;  %v4496_v55 = vmul.f32 %v3933_v1, %v4339_v38 }
 0x26d   : > { %v1124_v44 = vpop.xlane.xlu0 %1123  ;;  %3946 = vrcp.f32 %v1121_v41  ;;  %v1222_v50 = vpack.c.bf16 %v4491_v13, %v4488_v18 }
 0x26e   : > { %v3935_v27 = vpop.eup %3934  ;;  %3948 = vrcp.f32 %v1124_v44 }
 0x26f   : > { %v4499_v20 = vmul.f32 %v3935_v27, %v4343_v53  ;;  %3636 = vmatprep.mubr.msk.bf16.mxu0 %vm1055_vm2, %v1222_v50  ;;  %v3937_v29 = vpop.eup %3936 }
 0x270   : > { %v1127_v47 = vpop.xlane.xlu1 %1126  ;;  %v4506_v1 = vmul.f32 %v3937_v29, %v4349_v23 }
 0x271   : > { %v1130_v19 = vpop.xlane.xlu0 %1129  ;;  %3950 = vrcp.f32 %v1127_v47  ;;  %v1223_v43 = vpack.c.bf16 %v4499_v20, %v4496_v55 }
 0x272   : > { %v3939_v3 = vpop.eup %3938  ;;  %3952 = vrcp.f32 %v1130_v19 }
 0x273   : > { %3637 = vmatmul.mubr.msk.bf16.gmra.mxu0 %vm1055_vm2, %v1223_v43  ;;  %v3941_v49 = vpop.eup %3940  ;;  %v4509_v53 = vmul.f32 %v3939_v3, %v4357_v0 }
 0x274   : > { %v1133_v38 = vpop.xlane.xlu1 %1132  ;;  %v4514_v27 = vmul.f32 %v3941_v49, %v4353_v33 }
 0x275   : > { %v1136_v36 = vpop.xlane.xlu0 %1135  ;;  %3954 = vrcp.f32 %v1133_v38  ;;  %v1224_v41 = vpack.c.bf16 %v4509_v53, %v4506_v1 }
 0x276   : > { %v3943_v44 = vpop.eup %3942  ;;  %3956 = vrcp.f32 %v1136_v36 }
 0x277   : > { %v4517_v50 = vmul.f32 %v3943_v44, %v4361_v10  ;;  %3640 = vmatprep.mubr.msk.bf16.mxu0 %vm1055_vm2, %v1224_v41  ;;  %v3945_v19 = vpop.eup %3944 }
 0x278   : > { %v1139_v47 = vpop.xlane.xlu1 %1138  ;;  %v4524_v49 = vmul.f32 %v3945_v19, %v4365_v40 }
 0x279   : > { %v1142_v23 = vpop.xlane.xlu0 %1141  ;;  %3958 = vrcp.f32 %v1139_v47  ;;  %v1225_v0 = vpack.c.bf16 %v4517_v50, %v4514_v27 }
 0x27a   : > { %v3947_v29 = vpop.eup %3946  ;;  %3960 = vrcp.f32 %v1142_v23 }
 0x27b   : > { %3641 = vmatmul.mubr.msk.bf16.gmra.mxu0 %vm1055_vm2, %v1225_v0  ;;  %v3949_v43 = vpop.eup %3948  ;;  %v4527_v10 = vmul.f32 %v3947_v29, %v4373_v28 }
 0x27c   : > { %v1145_v33 = vpop.xlane.xlu1 %1144  ;;  %v4532_v44 = vmul.f32 %v3949_v43, %v4369_v7 }
 0x27d   : > { %v1148_v3 = vpop.xlane.xlu0 %1147  ;;  %3962 = vrcp.f32 %v1145_v33  ;;  %v1226_v38 = vpack.c.bf16 %v4527_v10, %v4524_v49 }
 0x27e   : > { %v3951_v36 = vpop.eup %3950  ;;  %3964 = vrcp.f32 %v1148_v3 }
 0x27f   : > { %v4535_v41 = vmul.f32 %v3951_v36, %v4379_v37  ;;  %3644 = vmatprep.mubr.msk.bf16.mxu0 %vm1055_vm2, %v1226_v38  ;;  %v3953_v40 = vpop.eup %3952 }
 0x280   : > { %v1151_v47 = vpop.xlane.xlu1 %1150  ;;  %v4542_v0 = vmul.f32 %v3953_v40, %v4381_v11 }
 0x281   : > { %3966 = vrcp.f32 %v1151_v47  ;;  %v1227_v28 = vpack.c.bf16 %v4535_v41, %v4532_v44 }
 0x282   : > { %v3955_v23 = vpop.eup %3954 }
 0x283   : > { %3645 = vmatmul.mubr.msk.bf16.gmra.mxu0 %vm1055_vm2, %v1227_v28  ;;  %v3957_v19 = vpop.eup %3956  ;;  %v4545_v7 = vmul.f32 %v3955_v23, %v4389_v62 }
 0x284   : > { %v4550_v43 = vmul.f32 %v3957_v19, %v4387_v39 }
 0x285   : > { %v1228_v29 = vpack.c.bf16 %v4545_v7, %v4542_v0 }
 0x286   : > { %v3959_v37 = vpop.eup %3958 }
 0x287   : > { %v4553_v3 = vmul.f32 %v3959_v37, %v4395_v17  ;;  %3648 = vmatprep.mubr.msk.bf16.mxu0 %vm1055_vm2, %v1228_v29  ;;  %v3961_v33 = vpop.eup %3960 }
 0x288   : > { %v4560_v38 = vmul.f32 %v3961_v33, %v4397_v48  ;;  %v5243_v48 = vmov 0   ;;  %v3822_v33 = vld [vmem:[%s5225_s7 + $0x78] sm:$0xff]  }
 0x289   : > { %v1229_v11 = vpack.c.bf16 %v4553_v3, %v4550_v43  ;;  %1631 = vmatprep.mubr.bf16.mxu1 %v5243_v48  ;;  %3385 = vmatprep.subr.bf16.mxu0 %v3822_v33  ;;  %v3827_v33 = vld [vmem:[%s5225_s7 + $0x68] sm:$0xff]  }
 0x28a   : > { %v3963_v36 = vpop.eup %3962 }
 0x28b   : > { %3649 = vmatmul.mubr.msk.bf16.gmra.mxu0 %vm1055_vm2, %v1229_v11  ;;  %v3965_v62 = vpop.eup %3964  ;;  %v4563_v47 = vmul.f32 %v3963_v36, %v4405_v51  ;;  %v3820_v51 = vld [vmem:[%s5225_s7 + $0x98] sm:$0xff]  }
 0x28c   : > { %v4568_v40 = vmul.f32 %v3965_v62, %v4403_v63  ;;  %3692 = vmatprep.subr.bf16.mxu1 %v3820_v51 }
 0x28d   : > { %v1230_v17 = vpack.c.bf16 %v4563_v47, %v4560_v38 }
 0x28e   : > { %v3967_v39 = vpop.eup %3966  ;;  %5261 = vst [vmem:[#allocation16_spill] sm:$0xff] %v4568_v40 }
 0x28f   : > { %v4571_v28 = vmul.f32 %v3967_v39, %v4411_v9  ;;  %3652 = vmatprep.mubr.msk.bf16.mxu0 %vm1055_vm2, %v1230_v17 }
 0x291   : > { %5262 = vst [vmem:[#allocation17_spill] sm:$0xff] %v4571_v28  ;;  %v1231_v23 = vpack.c.bf16 %v4571_v28, %v4568_v40 }
 0x293   : > { %3653 = vmatmul.mubr.msk.bf16.gmra.mxu0 %vm1055_vm2, %v1231_v23 }
 0x318   : > { %v3626_v63 = vpop.f32.mrf.mxu0 }
 0x319   : > { %v1328_v11 = vadd.f32 %v3626_v63, %v4149_v60  ;;  %v5263_v63 = vmov 0  }
 0x31a   : > { %v1319_v19 = vpop.f32.mrf.mxu0 }
 0x31b   : > { %v1320_v9 = vadd.f32 %v1319_v19, %v4143_v58  ;;  %v1448_v48 = vmax.f32 %v1328_v11, 0.0  ;;  %v3821_v19 = vld [vmem:[%s5225_s7 + $0x90] sm:$0xff]  }
 0x31c   : > { %v3627_v37 = vpop.f32.mrf.mxu0 }
 0x31d   : > { %v1331_v29 = vadd.f32 %v3627_v37, %v4140_v56  ;;  %v1446_v17 = vmax.f32 %v1320_v9, 0.0  ;;  %v3823_v56 = vld [vmem:[%s5225_s7 + $0x38] sm:$0xff]  }
 0x31e   : > { %v1322_v36 = vpop.f32.mrf.mxu0 }
 0x31f   : > { %v1323_v62 = vadd.f32 %v1322_v36, %v4146_v59  ;;  %v1449_v39 = vmax.f32 %v1331_v29, 0.0  ;;  %v3825_v59 = vld [vmem:[%s5225_s7 + $0x70] sm:$0xff]  }
 0x321   : > { %v1447_v23 = vmax.f32 %v1323_v62, 0.0  ;;  %v1479_v58 = vpack.c.bf16 %v1449_v39, %v1448_v48  ;;  %v3826_v48 = vld [vmem:[%s5225_s7 + $0x30] sm:$0xff]  }
 0x323   : > { %v1478_v28 = vpack.c.bf16 %v1447_v23, %v1446_v17  ;;  %v3630_v40 = vpop.f32.mrf.mxu0  ;;  %v3829_v23 = vld [vmem:[%s5225_s7 + $0x60] sm:$0xff]  }
 0x325   : > { %v1335_v60 = vpop.f32.mrf.mxu0  ;;  %3207 = vmatmul.mubr.msk.bf16.vlgmr.msra.gmra.mxu1 %vm508_vm0, %v1478_v28  ;;  %3660 = vmatprep.mubr.msk.bf16.mxu0 %vm508_vm0, %v1478_v28  ;;  %v3824_v28 = vld [vmem:[%s5225_s7 + $0x88] sm:$0xff]  }
 0x326   : > { %3661 = vmatmul.mubr.msk.bf16.vlgmr.msra.gmra.mxu0 %vm508_vm0, %v1479_v58  ;;  %1641 = vmatprep.mubr.bf16.mxu1 %v5263_v63  ;;  %v1336_v9 = vadd.f32 %v1335_v60, %v4161_v4  ;;  %v3830_v60 = vld [vmem:[%s5225_s7 + $0x20] sm:$0xff]  }
 0x327   : > { %v3631_v37 = vpop.f32.mrf.mxu0  ;;  %3693 = vmatpush3.bf16.msra.mxu1 %v3820_v51  ;;  %3386 = vmatpush3.bf16.msra.mxu0 %v3823_v56  ;;  %v1344_v51 = vadd.f32 %v3630_v40, %v4167_v6 }
 0x328   : > { %v1347_v29 = vadd.f32 %v3631_v37, %v4158_v2  ;;  %3694 = vmatprep.subr.bf16.mxu1 %v3821_v19  ;;  %3387 = vmatprep.subr.bf16.mxu0 %v3825_v59  ;;  %v3828_v2 = vld [vmem:[%s5225_s7 + $0x28] sm:$0xff]   ;;  %v1450_v4 = vmax.f32 %v1336_v9, 0.0 }
 0x329   : > { %v1338_v11 = vpop.f32.mrf.mxu0  ;;  %v1452_v6 = vmax.f32 %v1344_v51, 0.0 }
 0x32a   : > { %v1339_v36 = vadd.f32 %v1338_v11, %v4164_v5  ;;  %v1453_v62 = vmax.f32 %v1347_v29, 0.0  ;;  %v3833_v5 = vld [vmem:[%s5225_s7 + $0x80] sm:$0xff]  }
 0x32b   : > { %v3634_v39 = vpop.f32.mrf.mxu0  ;;  %3695 = vmatpush3.bf16.msra.mxu1 %v3821_v19  ;;  %3388 = vmatpush3.bf16.msra.mxu0 %v3826_v48 }
 0x32c   : > { %v1451_v17 = vmax.f32 %v1339_v36, 0.0  ;;  %3696 = vmatprep.subr.bf16.mxu1 %v3824_v28  ;;  %3389 = vmatprep.subr.bf16.mxu0 %v3827_v33  ;;  %v1481_v19 = vpack.c.bf16 %v1453_v62, %v1452_v6  ;;  %v1360_v9 = vadd.f32 %v3634_v39, %v4185_v16  ;;  %v3834_v16 = vld [vmem:[%s5225_s7 + $0x50] sm:$0xff]   ;;  %v3836_v6 = vld [vmem:[%s5225_s7 + $0x48] sm:$0xff]  }
 0x32d   : > { %v1351_v40 = vpop.f32.mrf.mxu0  ;;  %3208 = vmatmul.mubr.msk.bf16.gmra.mxu1 %vm508_vm0, %v1479_v58  ;;  %v3831_v58 = vld [vmem:[%s5225_s7 + $0x58] sm:$0xff]  }
 0x32e   : > { %v1480_v56 = vpack.c.bf16 %v1451_v17, %v1450_v4  ;;  %1651 = vmatprep.mubr.bf16.mxu1 %v5263_v63  ;;  %v1352_v37 = vadd.f32 %v1351_v40, %v4179_v14  ;;  %v1456_v36 = vmax.f32 %v1360_v9, 0.0  ;;  %v3835_v4 = vld [vmem:[%s5225_s7 + $0x10] sm:$0xff]  }
 0x32f   : > { %v3635_v59 = vpop.f32.mrf.mxu0  ;;  %3697 = vmatpush3.bf16.msra.mxu1 %v3824_v28  ;;  %3390 = vmatpush3.bf16.msra.mxu0 %v3828_v2 }
 0x330   : > { %v1363_v48 = vadd.f32 %v3635_v59, %v4176_v12  ;;  %3664 = vmatprep.mubr.msk.bf16.mxu0 %vm508_vm0, %v1480_v56  ;;  %3391 = vmatprep.subr.bf16.mxu0 %v3829_v23  ;;  %v3832_v12 = vld [vmem:[%s5225_s7 + $0x18] sm:$0xff]   ;;  %v1454_v14 = vmax.f32 %v1352_v37, 0.0 }
 0x331   : > { %v1354_v29 = vpop.f32.mrf.mxu0  ;;  %3665 = vmatmul.mubr.msk.bf16.gmra.mxu0 %vm508_vm0, %v1481_v19  ;;  %3698 = vmatprep.subr.bf16.mxu1 %v3833_v5 }
 0x332   : > { %v1355_v28 = vadd.f32 %v1354_v29, %v4182_v15  ;;  %v1457_v33 = vmax.f32 %v1363_v48, 0.0 }
 0x333   : > { %v3638_v51 = vpop.f32.mrf.mxu0  ;;  %3392 = vmatpush3.bf16.msra.mxu0 %v3830_v60  ;;  %3699 = vmatpush3.bf16.msra.mxu1 %v3833_v5 }
 0x334   : > { %v1455_v11 = vmax.f32 %v1355_v28, 0.0  ;;  %3393 = vmatprep.subr.bf16.mxu0 %v3831_v58  ;;  %v1483_v39 = vpack.c.bf16 %v1457_v33, %v1456_v36  ;;  %v1376_v40 = vadd.f32 %v3638_v51, %v4203_v26  ;;  %v5264_v33 = vld [vmem:[#allocation3_spill] sm:$0xff] }
 0x335   : > { %v1367_v62 = vpop.f32.mrf.mxu0  ;;  %3209 = vmatmul.mubr.msk.bf16.gmra.mxu1 %vm508_vm0, %v1480_v56 }
 0x336   : > { %v1482_v15 = vpack.c.bf16 %v1455_v11, %v1454_v14  ;;  %1661 = vmatprep.mubr.bf16.mxu1 %v5263_v63  ;;  %v1368_v17 = vadd.f32 %v1367_v62, %v4197_v24  ;;  %v1460_v48 = vmax.f32 %v1376_v40, 0.0  ;;  %v5267_v40 = vld [vmem:[#allocation4_spill] sm:$0xff] }
 0x337   : > { %v3639_v2 = vpop.f32.mrf.mxu0  ;;  %3394 = vmatpush3.bf16.msra.mxu0 %v3832_v12 }
 0x338   : > { %v1379_v23 = vadd.f32 %v3639_v2, %v4194_v22  ;;  %3668 = vmatprep.mubr.msk.bf16.mxu0 %vm508_vm0, %v1482_v15  ;;  %3395 = vmatprep.subr.bf16.mxu0 %v3834_v16  ;;  %v3837_v22 = vld [vmem:[%s5225_s7 + $0x8] sm:$0xff]   ;;  %v1458_v24 = vmax.f32 %v1368_v17, 0.0 }
 0x339   : > { %v1370_v5 = vpop.f32.mrf.mxu0  ;;  %3669 = vmatmul.mubr.msk.bf16.gmra.mxu0 %vm508_vm0, %v1483_v39 }
 0x33a   : > { %v1371_v56 = vadd.f32 %v1370_v5, %v4200_v25  ;;  %v1461_v59 = vmax.f32 %v1379_v23, 0.0  ;;  %v5266_v23 = vld [vmem:[#allocation5_spill] sm:$0xff] }
 0x33b   : > { %v3642_v60 = vpop.f32.mrf.mxu0  ;;  %3396 = vmatpush3.bf16.msra.mxu0 %v3835_v4 }
 0x33c   : > { %v1459_v37 = vmax.f32 %v1371_v56, 0.0  ;;  %3397 = vmatprep.subr.bf16.mxu0 %v3836_v6  ;;  %v4662_v9 = vpack.c.bf16 %v1461_v59, %v1460_v48  ;;  %v1392_v51 = vadd.f32 %v3642_v60, %v5264_v33  ;;  %v5268_v56 = vld [vmem:[#allocation7_spill] sm:$0xff] }
 0x33d   : > { %v1383_v58 = vpop.f32.mrf.mxu0  ;;  %3210 = vmatmul.mubr.msk.bf16.gmra.mxu1 %vm508_vm0, %v1481_v19  ;;  %v5265_v19 = vld [vmem:[#allocation2_spill] sm:$0xff] }
 0x33e   : > { %v1484_v26 = vpack.c.bf16 %v1459_v37, %v1458_v24  ;;  %1671 = vmatprep.mubr.bf16.mxu1 %v5263_v63  ;;  %v1384_v29 = vadd.f32 %v1383_v58, %v4215_v34  ;;  %v1464_v2 = vmax.f32 %v1392_v51, 0.0 }
 0x33f   : > { %v3643_v25 = vpop.f32.mrf.mxu0  ;;  %3398 = vmatpush3.bf16.msra.mxu0 %v3837_v22  ;;  %v5269_v22 = vld [vmem:[#allocation6_spill] sm:$0xff] }
 0x340   : > { %v1395_v28 = vadd.f32 %v3643_v25, %v4212_v32  ;;  %3672 = vmatprep.mubr.msk.bf16.mxu0 %vm508_vm0, %v1484_v26  ;;  %v1462_v36 = vmax.f32 %v1384_v29, 0.0 }
 0x341   : > { %v1386_v12 = vpop.f32.mrf.mxu0  ;;  %3673 = vmatmul.mubr.msk.bf16.gmra.mxu0 %vm508_vm0, %v4662_v9 }
 0x342   : > { %v1387_v14 = vadd.f32 %v1386_v12, %v5265_v19  ;;  %v1465_v11 = vmax.f32 %v1395_v28, 0.0  ;;  %v5270_v12 = vld [vmem:[#allocation9_spill] sm:$0xff] }
 0x343   : > { %v3646_v16 = vpop.f32.mrf.mxu0 }
 0x344   : > { %v1463_v62 = vmax.f32 %v1387_v14, 0.0  ;;  %v1487_v32 = vpack.c.bf16 %v1465_v11, %v1464_v2  ;;  %v1408_v59 = vadd.f32 %v3646_v16, %v5268_v56  ;;  %v5271_v14 = vld [vmem:[#allocation8_spill] sm:$0xff]  ;;  %v5272_v16 = vld [vmem:[#allocation11_spill] sm:$0xff]  ;;  %v5273_v2 = vld [vmem:[#allocation10_spill] sm:$0xff] }
 0x345   : > { %v1399_v4 = vpop.f32.mrf.mxu0  ;;  %3211 = vmatmul.mubr.msk.bf16.gmra.mxu1 %vm508_vm0, %v1482_v15 }
 0x346   : > { %v1486_v34 = vpack.c.bf16 %v1463_v62, %v1462_v36  ;;  %1681 = vmatprep.mubr.bf16.mxu1 %v5263_v63  ;;  %v1400_v6 = vadd.f32 %v1399_v4, %v5266_v23  ;;  %v1468_v25 = vmax.f32 %v1408_v59, 0.0 }
 0x347   : > { %v3647_v17 = vpop.f32.mrf.mxu0 }
 0x348   : > { %v1411_v5 = vadd.f32 %v3647_v17, %v5267_v40  ;;  %3676 = vmatprep.mubr.msk.bf16.mxu0 %vm508_vm0, %v1486_v34  ;;  %v1466_v48 = vmax.f32 %v1400_v6, 0.0 }
 0x349   : > { %v1402_v60 = vpop.f32.mrf.mxu0  ;;  %3677 = vmatmul.mubr.msk.bf16.gmra.mxu0 %vm508_vm0, %v1487_v32 }
 0x34a   : > { %v1403_v24 = vadd.f32 %v1402_v60, %v5269_v22  ;;  %v1469_v37 = vmax.f32 %v1411_v5, 0.0  ;;  %v5274_v22 = vld [vmem:[#allocation13_spill] sm:$0xff] }
 0x34b   : > { %v3650_v15 = vpop.f32.mrf.mxu0 }
 0x34c   : > { %v1467_v58 = vmax.f32 %v1403_v24, 0.0  ;;  %v1489_v33 = vpack.c.bf16 %v1469_v37, %v1468_v25  ;;  %v1424_v36 = vadd.f32 %v3650_v15, %v5272_v16  ;;  %v5275_v37 = vld [vmem:[#allocation12_spill] sm:$0xff] }
 0x34d   : > { %v1415_v29 = vpop.f32.mrf.mxu0  ;;  %3212 = vmatmul.mubr.msk.bf16.gmra.mxu1 %vm508_vm0, %v1483_v39 }
 0x34e   : > { %v1488_v28 = vpack.c.bf16 %v1467_v58, %v1466_v48  ;;  %1691 = vmatprep.mubr.bf16.mxu1 %v5263_v63  ;;  %v1416_v19 = vadd.f32 %v1415_v29, %v5270_v12  ;;  %v1472_v40 = vmax.f32 %v1424_v36, 0.0  ;;  %v5276_v48 = vld [vmem:[#allocation15_spill] sm:$0xff]  ;;  %v5277_v29 = vld [vmem:[#allocation14_spill] sm:$0xff] }
 0x34f   : > { %v3651_v51 = vpop.f32.mrf.mxu0  ;;  %v3839_v36 = vld [vmem:[%s5225_s7] sm:$0xff]  }
 0x350   : > { %v1427_v11 = vadd.f32 %v3651_v51, %v5271_v14  ;;  %3680 = vmatprep.mubr.msk.bf16.mxu0 %vm508_vm0, %v1488_v28  ;;  %v1470_v23 = vmax.f32 %v1416_v19, 0.0 }
 0x351   : > { %v1418_v62 = vpop.f32.mrf.mxu0  ;;  %3681 = vmatmul.mubr.msk.bf16.gmra.mxu0 %vm508_vm0, %v1489_v33 }
 0x352   : > { %v1419_v4 = vadd.f32 %v1418_v62, %v5273_v2  ;;  %v1473_v17 = vmax.f32 %v1427_v11, 0.0  ;;  %v1502_v2 = vld [vmem:[%s5224_s6] sm:$0x7] }
 0x353   : > { %v3654_v39 = vpop.f32.mrf.mxu0 }
 0x354   : > { %v1471_v6 = vmax.f32 %v1419_v4, 0.0  ;;  %v1491_v59 = vpack.c.bf16 %v1473_v17, %v1472_v40  ;;  %v1440_v58 = vadd.f32 %v3654_v39, %v5276_v48 }
 0x355   : > { %v1431_v5 = vpop.f32.mrf.mxu0  ;;  %3213 = vmatmul.mubr.msk.bf16.gmra.mxu1 %vm508_vm0, %v1484_v26 }
 0x356   : > { %v1490_v56 = vpack.c.bf16 %v1471_v6, %v1470_v23  ;;  %1701 = vmatprep.mubr.bf16.mxu1 %v5263_v63  ;;  %v1432_v24 = vadd.f32 %v1431_v5, %v5274_v22  ;;  %v1476_v14 = vmax.f32 %v1440_v58, 0.0 }
 0x357   : > { %v3655_v60 = vpop.f32.mrf.mxu0 }
 0x358   : > { %v1443_v15 = vadd.f32 %v3655_v60, %v5275_v37  ;;  %3684 = vmatprep.mubr.msk.bf16.mxu0 %vm508_vm0, %v1490_v56  ;;  %v1474_v26 = vmax.f32 %v1432_v24, 0.0 }
 0x359   : > { %v1434_v25 = vpop.f32.mrf.mxu0  ;;  %3685 = vmatmul.mubr.msk.bf16.gmra.mxu0 %vm508_vm0, %v1491_v59 }
 0x35a   : > { %v1435_v51 = vadd.f32 %v1434_v25, %v5277_v29  ;;  %v1477_v12 = vmax.f32 %v1443_v15, 0.0 }
 0x35c   : > { %v1475_v19 = vmax.f32 %v1435_v51, 0.0  ;;  %v1493_v16 = vpack.c.bf16 %v1477_v12, %v1476_v14 }
 0x35d   : > { %3214 = vmatmul.mubr.msk.bf16.gmra.mxu1 %vm508_vm0, %v4662_v9  ;;  %v3838_v9 = vld [vmem:[%s5225_s7 + $0x40] sm:$0xff]  }
 0x35e   : > { %v1492_v11 = vpack.c.bf16 %v1475_v19, %v1474_v26  ;;  %1711 = vmatprep.mubr.bf16.mxu1 %v5263_v63  ;;  %3399 = vmatprep.subr.bf16.mxu0 %v3838_v9 }
 0x35f   : > { %3400 = vmatpush3.bf16.msra.mxu0 %v3839_v36 }
 0x360   : > { %3688 = vmatprep.mubr.msk.bf16.mxu0 %vm508_vm0, %v1492_v11 }
 0x361   : > { %3689 = vmatmul.mubr.msk.bf16.gmra.mxu0 %vm508_vm0, %v1493_v16 }
 0x365   : > { %3215 = vmatmul.mubr.msk.bf16.gmra.mxu1 %vm508_vm0, %v1486_v34  ;;  %v4715_v34 = vld [vmem:[%s5227_s9] sm:$0xf] }
 0x366   : > { %1721 = vmatprep.mubr.bf16.mxu1 %v5263_v63  ;;  %3732 = vmatprep.subr.msk.mxu1 %vm2732_vm3, %v4715_v34 }
 0x36d   : > { %3216 = vmatmul.mubr.msk.bf16.gmra.mxu1 %vm508_vm0, %v1487_v32  ;;  %v1504_v32 = vlaneseq }
 0x36e   : > { %1731 = vmatprep.mubr.bf16.mxu1 %v5263_v63 }
 0x375   : > { %3217 = vmatmul.mubr.msk.bf16.gmra.mxu1 %vm508_vm0, %v1488_v28  ;;  %v1505_v28 = vshrl.u32 %v1504_v32, 7 }
 0x376   : > { %1741 = vmatprep.mubr.bf16.mxu1 %v5263_v63 }
 0x377   : > { %v1506_v62 = vsub.s32 0, %v1505_v28  ;;  %v1514_v4 = vsub.s32 2, %v1505_v28 }
 0x379   : > { %v4733_v6 = vrot.slane %v1502_v2, %v1506_v62  ;;  %v4735_v5 = vrot.slane %v1502_v2, %v1514_v4 }
 0x37d   : > { %3218 = vmatmul.mubr.msk.bf16.gmra.mxu1 %vm508_vm0, %v1489_v33  ;;  %v1510_v33 = vsub.s32 1, %v1505_v28 }
 0x37e   : > { %1751 = vmatprep.mubr.bf16.mxu1 %v5263_v63 }
 0x37f   : > { %v4731_v23 = vrot.slane %v1502_v2, %v1510_v33 }
 0x385   : > { %3219 = vmatmul.mubr.msk.bf16.gmra.mxu1 %vm508_vm0, %v1490_v56 }
 0x386   : > { %1761 = vmatprep.mubr.bf16.mxu1 %v5263_v63 }
 0x38d   : > { %3220 = vmatmul.mubr.msk.bf16.gmra.mxu1 %vm508_vm0, %v1491_v59 }
 0x38e   : > { %1771 = vmatprep.mubr.bf16.mxu1 %v5263_v63 }
 0x395   : > { %3221 = vmatmul.mubr.msk.bf16.gmra.mxu1 %vm508_vm0, %v1492_v11 }
 0x396   : > { %1781 = vmatprep.mubr.bf16.mxu1 %v5263_v63 }
 0x39d   : > { %3222 = vmatmul.mubr.msk.bf16.gmra.mxu1 %vm508_vm0, %v1493_v16 }
 0x3e5   : > { %v1633_v17 = vpop.f32.mrf.mxu1 }
 0x3e6   : > { %v3662_v39 = vpop.f32.mrf.mxu0  ;;  %v1634_v24 = vadd.f32 %v1633_v17, %v4733_v6 }
 0x3e7   : > { %v1635_v40 = vpop.f32.mrf.mxu1  ;;  %v1835_v58 = vadd.f32 %v3662_v39, %v4735_v5 }
 0x3e8   : > { %v1826_v63 = vpop.f32.mrf.mxu0  ;;  %v1636_v59 = vadd.f32 %v1635_v40, %v4731_v23  ;;  %v1953_v16 = vmax.f32 %v1634_v24, 0.0 }
 0x3e9   : > { %v1637_v56 = vpop.f32.mrf.mxu1  ;;  %v1827_v37 = vadd.f32 %v1826_v63, %v4735_v5  ;;  %v1961_v28 = vmax.f32 %v1835_v58, 0.0 }
 0x3ea   : > { %v1638_v60 = vadd.f32 %v1637_v56, %v4733_v6  ;;  %v3663_v22 = vpop.f32.mrf.mxu0  ;;  %v1954_v19 = vmax.f32 %v1636_v59, 0.0 }
 0x3eb   : > { %v1838_v15 = vadd.f32 %v3663_v22, %v4735_v5  ;;  %v1639_v48 = vpop.f32.mrf.mxu1  ;;  %v1955_v9 = vmax.f32 %v1827_v37, 0.0 }
 0x3ec   : > { %v1640_v25 = vadd.f32 %v1639_v48, %v4731_v23  ;;  %v1829_v29 = vpop.f32.mrf.mxu0  ;;  %v1956_v51 = vmax.f32 %v1638_v60, 0.0 }
 0x3ed   : > { %v1830_v12 = vadd.f32 %v1829_v29, %v4735_v5  ;;  %v1643_v26 = vpop.f32.mrf.mxu1  ;;  %v1964_v14 = vmax.f32 %v1838_v15, 0.0 }
 0x3ee   : > { %v1957_v11 = vmax.f32 %v1640_v25, 0.0  ;;  %v2049_v62 = vpack.c.bf16 %v1956_v51, %v1953_v16  ;;  %v1644_v56 = vadd.f32 %v1643_v26, %v4733_v6 }
 0x3ef   : > { %v1958_v36 = vmax.f32 %v1830_v12, 0.0  ;;  %v1645_v32 = vpop.f32.mrf.mxu1  ;;  %v2054_v39 = vpack.c.bf16 %v1964_v14, %v1961_v28 }
 0x3f0   : > { %v2050_v33 = vpack.c.bf16 %v1957_v11, %v1954_v19  ;;  %v1646_v40 = vadd.f32 %v1645_v32, %v4731_v23  ;;  %v1959_v29 = vmax.f32 %v1644_v56, 0.0 }
 0x3f1   : > { %v2051_v2 = vpack.c.bf16 %v1958_v36, %v1955_v9  ;;  %v1647_v4 = vpop.f32.mrf.mxu1  ;;  %v3666_v17 = vpop.f32.mrf.mxu0 }
 0x3f2   : > { %v1648_v63 = vadd.f32 %v1647_v4, %v4733_v6  ;;  %2345 = vmatprep.mubr.bf16.mxu0 %v2050_v33  ;;  %v1960_v48 = vmax.f32 %v1646_v40, 0.0  ;;  %v1851_v51 = vadd.f32 %v3666_v17, %v4735_v5 }
 0x3f3   : > { %v1649_v59 = vpop.f32.mrf.mxu1  ;;  %v1842_v60 = vpop.f32.mrf.mxu0  ;;  %2346 = vmatmul.mubr.bf16.vlgmr.msra.gmra.mxu0 %v2049_v62  ;;  %3700 = vmatprep.mubr.msk.bf16.mxu1 %vm2264_vm4, %v2051_v2 }
 0x3f4   : > { %v1650_v22 = vadd.f32 %v1649_v59, %v4731_v23  ;;  %3701 = vmatmul.mubr.msk.bf16.vlgmr.msra.gmra.mxu1 %vm2264_vm4, %v2054_v39  ;;  %v1962_v24 = vmax.f32 %v1648_v63, 0.0  ;;  %v1843_v25 = vadd.f32 %v1842_v60, %v4735_v5  ;;  %v1973_v62 = vmax.f32 %v1851_v51, 0.0 }
 0x3f5   : > { %v1653_v37 = vpop.f32.mrf.mxu1  ;;  %v3667_v15 = vpop.f32.mrf.mxu0  ;;  %3733 = vmatpush3.msk.msra.mxu1 %vm2732_vm3, %v4715_v34 }
 0x3f6   : > { %v1963_v58 = vmax.f32 %v1650_v22, 0.0  ;;  %v1854_v12 = vadd.f32 %v3667_v15, %v4735_v5  ;;  %v2052_v16 = vpack.c.bf16 %v1962_v24, %v1959_v29  ;;  %v1967_v28 = vmax.f32 %v1843_v25, 0.0 }
 0x3f7   : > { %v1655_v26 = vpop.f32.mrf.mxu1  ;;  %v1845_v19 = vpop.f32.mrf.mxu0  ;;  %v1654_v2 = vadd.f32 %v1653_v37, %v4733_v6 }
 0x3f8   : > { %v1846_v14 = vadd.f32 %v1845_v19, %v4735_v5  ;;  %v2053_v11 = vpack.c.bf16 %v1963_v58, %v1960_v48  ;;  %v1976_v9 = vmax.f32 %v1854_v12, 0.0  ;;  %v1656_v4 = vadd.f32 %v1655_v26, %v4731_v23 }
 0x3f9   : > { %v1657_v36 = vpop.f32.mrf.mxu1  ;;  %v3670_v32 = vpop.f32.mrf.mxu0  ;;  %v1965_v37 = vmax.f32 %v1654_v2, 0.0 }
 0x3fa   : > { %v1970_v34 = vmax.f32 %v1846_v14, 0.0  ;;  %v1658_v33 = vadd.f32 %v1657_v36, %v4733_v6  ;;  %2353 = vmatprep.mubr.bf16.mxu0 %v2053_v11  ;;  %v2060_v56 = vpack.c.bf16 %v1976_v9, %v1973_v62  ;;  %v1966_v58 = vmax.f32 %v1656_v4, 0.0 }
 0x3fb   : > { %v1659_v17 = vpop.f32.mrf.mxu1  ;;  %v1858_v39 = vpop.f32.mrf.mxu0  ;;  %2354 = vmatmul.mubr.bf16.gmra.mxu0 %v2052_v16  ;;  %v1867_v25 = vadd.f32 %v3670_v32, %v4735_v5 }
 0x3fc   : > { %v2057_v40 = vpack.c.bf16 %v1970_v34, %v1967_v28  ;;  %v1660_v63 = vadd.f32 %v1659_v17, %v4731_v23  ;;  %v1968_v59 = vmax.f32 %v1658_v33, 0.0  ;;  %v1859_v15 = vadd.f32 %v1858_v39, %v4735_v5 }
 0x3fd   : > { %v1663_v60 = vpop.f32.mrf.mxu1  ;;  %v3671_v22 = vpop.f32.mrf.mxu0  ;;  %v1985_v33 = vmax.f32 %v1867_v25, 0.0 }
 0x3fe   : > { %v1969_v24 = vmax.f32 %v1660_v63, 0.0  ;;  %v1870_v48 = vadd.f32 %v3671_v22, %v4735_v5  ;;  %3704 = vmatprep.mubr.msk.bf16.mxu1 %vm2264_vm4, %v2057_v40  ;;  %v2055_v26 = vpack.c.bf16 %v1968_v59, %v1965_v37  ;;  %v1979_v9 = vmax.f32 %v1859_v15, 0.0 }
 0x3ff   : > { %v1665_v29 = vpop.f32.mrf.mxu1  ;;  %v1861_v51 = vpop.f32.mrf.mxu0  ;;  %3705 = vmatmul.mubr.msk.bf16.gmra.mxu1 %vm2264_vm4, %v2060_v56  ;;  %v1664_v32 = vadd.f32 %v1663_v60, %v4733_v6 }
 0x400   : > { %v1862_v12 = vadd.f32 %v1861_v51, %v4735_v5  ;;  %v1988_v19 = vmax.f32 %v1870_v48, 0.0  ;;  %v2056_v16 = vpack.c.bf16 %v1969_v24, %v1966_v58  ;;  %v1666_v36 = vadd.f32 %v1665_v29, %v4731_v23 }
 0x401   : > { %v1667_v14 = vpop.f32.mrf.mxu1  ;;  %v3674_v11 = vpop.f32.mrf.mxu0  ;;  %v1971_v15 = vmax.f32 %v1664_v32, 0.0 }
 0x402   : > { %v1982_v28 = vmax.f32 %v1862_v12, 0.0  ;;  %v1668_v34 = vadd.f32 %v1667_v14, %v4733_v6  ;;  %2361 = vmatprep.mubr.bf16.mxu0 %v2056_v16  ;;  %v2066_v39 = vpack.c.bf16 %v1988_v19, %v1985_v33  ;;  %v1972_v59 = vmax.f32 %v1666_v36, 0.0 }
 0x403   : > { %v1669_v62 = vpop.f32.mrf.mxu1  ;;  %v1874_v2 = vpop.f32.mrf.mxu0  ;;  %2362 = vmatmul.mubr.bf16.gmra.mxu0 %v2055_v26  ;;  %v1883_v60 = vadd.f32 %v3674_v11, %v4735_v5 }
 0x404   : > { %v2063_v4 = vpack.c.bf16 %v1982_v28, %v1979_v9  ;;  %v1670_v17 = vadd.f32 %v1669_v62, %v4731_v23  ;;  %v1974_v40 = vmax.f32 %v1668_v34, 0.0  ;;  %v1875_v24 = vadd.f32 %v1874_v2, %v4735_v5 }
 0x405   : > { %v1673_v63 = vpop.f32.mrf.mxu1  ;;  %v3675_v56 = vpop.f32.mrf.mxu0  ;;  %v1997_v11 = vmax.f32 %v1883_v60, 0.0 }
 0x406   : > { %v1975_v22 = vmax.f32 %v1670_v17, 0.0  ;;  %3708 = vmatprep.mubr.msk.bf16.mxu1 %vm2264_vm4, %v2063_v4  ;;  %v1886_v48 = vadd.f32 %v3675_v56, %v4735_v5  ;;  %v2058_v51 = vpack.c.bf16 %v1974_v40, %v1971_v15  ;;  %v1991_v14 = vmax.f32 %v1875_v24, 0.0 }
 0x407   : > { %v1675_v37 = vpop.f32.mrf.mxu1  ;;  %v1877_v58 = vpop.f32.mrf.mxu0  ;;  %3709 = vmatmul.mubr.msk.bf16.gmra.mxu1 %vm2264_vm4, %v2066_v39  ;;  %v1674_v33 = vadd.f32 %v1673_v63, %v4733_v6 }
 0x408   : > { %v1878_v25 = vadd.f32 %v1877_v58, %v4735_v5  ;;  %v2059_v29 = vpack.c.bf16 %v1975_v22, %v1972_v59  ;;  %v2000_v12 = vmax.f32 %v1886_v48, 0.0  ;;  %v1676_v16 = vadd.f32 %v1675_v37, %v4731_v23 }
 0x409   : > { %v1677_v26 = vpop.f32.mrf.mxu1  ;;  %v3678_v19 = vpop.f32.mrf.mxu0  ;;  %v1977_v63 = vmax.f32 %v1674_v33, 0.0 }
 0x40a   : > { %v1994_v9 = vmax.f32 %v1878_v25, 0.0  ;;  %v1678_v36 = vadd.f32 %v1677_v26, %v4733_v6  ;;  %2369 = vmatprep.mubr.bf16.mxu0 %v2059_v29  ;;  %v2072_v2 = vpack.c.bf16 %v2000_v12, %v1997_v11  ;;  %v1978_v39 = vmax.f32 %v1676_v16, 0.0 }
 0x40b   : > { %v1679_v28 = vpop.f32.mrf.mxu1  ;;  %v1890_v34 = vpop.f32.mrf.mxu0  ;;  %2370 = vmatmul.mubr.bf16.gmra.mxu0 %v2058_v51  ;;  %v1899_v60 = vadd.f32 %v3678_v19, %v4735_v5 }
 0x40c   : > { %v2069_v32 = vpack.c.bf16 %v1994_v9, %v1991_v14  ;;  %v1680_v62 = vadd.f32 %v1679_v28, %v4731_v23  ;;  %v1980_v40 = vmax.f32 %v1678_v36, 0.0  ;;  %v1891_v22 = vadd.f32 %v1890_v34, %v4735_v5 }
 0x40d   : > { %v1683_v4 = vpop.f32.mrf.mxu1  ;;  %v3679_v17 = vpop.f32.mrf.mxu0  ;;  %v2009_v28 = vmax.f32 %v1899_v60, 0.0 }
 0x40e   : > { %v1981_v56 = vmax.f32 %v1680_v62, 0.0  ;;  %v1902_v59 = vadd.f32 %v3679_v17, %v4735_v5  ;;  %3712 = vmatprep.mubr.msk.bf16.mxu1 %vm2264_vm4, %v2069_v32  ;;  %v2061_v29 = vpack.c.bf16 %v1980_v40, %v1977_v63  ;;  %v2003_v14 = vmax.f32 %v1891_v22, 0.0 }
 0x40f   : > { %v1685_v24 = vpop.f32.mrf.mxu1  ;;  %v1893_v15 = vpop.f32.mrf.mxu0  ;;  %3713 = vmatmul.mubr.msk.bf16.gmra.mxu1 %vm2264_vm4, %v2072_v2  ;;  %v1684_v16 = vadd.f32 %v1683_v4, %v4733_v6 }
 0x410   : > { %v2062_v48 = vpack.c.bf16 %v1981_v56, %v1978_v39  ;;  %v1894_v37 = vadd.f32 %v1893_v15, %v4735_v5  ;;  %v2012_v51 = vmax.f32 %v1902_v59, 0.0  ;;  %v1686_v12 = vadd.f32 %v1685_v24, %v4731_v23 }
 0x411   : > { %v1687_v58 = vpop.f32.mrf.mxu1  ;;  %v3682_v25 = vpop.f32.mrf.mxu0  ;;  %v1983_v56 = vmax.f32 %v1684_v16, 0.0 }
 0x412   : > { %v1688_v26 = vadd.f32 %v1687_v58, %v4733_v6  ;;  %2377 = vmatprep.mubr.bf16.mxu0 %v2062_v48  ;;  %v2006_v9 = vmax.f32 %v1894_v37, 0.0  ;;  %v2078_v2 = vpack.c.bf16 %v2012_v51, %v2009_v28  ;;  %v1984_v17 = vmax.f32 %v1686_v12, 0.0 }
 0x413   : > { %v1689_v36 = vpop.f32.mrf.mxu1  ;;  %v1906_v11 = vpop.f32.mrf.mxu0  ;;  %2378 = vmatmul.mubr.bf16.gmra.mxu0 %v2061_v29  ;;  %v1915_v24 = vadd.f32 %v3682_v25, %v4735_v5 }
 0x414   : > { %v1690_v19 = vadd.f32 %v1689_v36, %v4731_v23  ;;  %v2075_v34 = vpack.c.bf16 %v2006_v9, %v2003_v14  ;;  %v1986_v33 = vmax.f32 %v1688_v26, 0.0  ;;  %v1907_v40 = vadd.f32 %v1906_v11, %v4735_v5 }
 0x415   : > { %v1693_v32 = vpop.f32.mrf.mxu1  ;;  %v3683_v62 = vpop.f32.mrf.mxu0  ;;  %v2021_v9 = vmax.f32 %v1915_v24, 0.0 }
 0x416   : > { %v1987_v39 = vmax.f32 %v1690_v19, 0.0  ;;  %v1918_v59 = vadd.f32 %v3683_v62, %v4735_v5  ;;  %3716 = vmatprep.mubr.msk.bf16.mxu1 %vm2264_vm4, %v2075_v34  ;;  %v2064_v60 = vpack.c.bf16 %v1986_v33, %v1983_v56  ;;  %v2015_v29 = vmax.f32 %v1907_v40, 0.0 }
 0x417   : > { %v1695_v4 = vpop.f32.mrf.mxu1  ;;  %v1909_v22 = vpop.f32.mrf.mxu0  ;;  %3717 = vmatmul.mubr.msk.bf16.gmra.mxu1 %vm2264_vm4, %v2078_v2  ;;  %v1694_v25 = vadd.f32 %v1693_v32, %v4733_v6 }
 0x418   : > { %v2065_v15 = vpack.c.bf16 %v1987_v39, %v1984_v17  ;;  %v1910_v63 = vadd.f32 %v1909_v22, %v4735_v5  ;;  %v1696_v48 = vadd.f32 %v1695_v4, %v4731_v23  ;;  %v2024_v51 = vmax.f32 %v1918_v59, 0.0 }
 0x419   : > { %v1697_v37 = vpop.f32.mrf.mxu1  ;;  %v3686_v58 = vpop.f32.mrf.mxu0  ;;  %v1989_v59 = vmax.f32 %v1694_v25, 0.0 }
 0x41a   : > { %v2018_v12 = vmax.f32 %v1910_v63, 0.0  ;;  %v1698_v26 = vadd.f32 %v1697_v37, %v4733_v6  ;;  %2385 = vmatprep.mubr.bf16.mxu0 %v2065_v15  ;;  %v1990_v28 = vmax.f32 %v1696_v48, 0.0  ;;  %v2084_v33 = vpack.c.bf16 %v2024_v51, %v2021_v9 }
 0x41b   : > { %v1699_v14 = vpop.f32.mrf.mxu1  ;;  %v1922_v16 = vpop.f32.mrf.mxu0  ;;  %2386 = vmatmul.mubr.bf16.gmra.mxu0 %v2064_v60  ;;  %v1931_v32 = vadd.f32 %v3686_v58, %v4735_v5 }
 0x41c   : > { %v2081_v36 = vpack.c.bf16 %v2018_v12, %v2015_v29  ;;  %v1700_v11 = vadd.f32 %v1699_v14, %v4731_v23  ;;  %v1992_v62 = vmax.f32 %v1698_v26, 0.0  ;;  %v1923_v39 = vadd.f32 %v1922_v16, %v4735_v5 }
 0x41d   : > { %v1703_v19 = vpop.f32.mrf.mxu1  ;;  %v3687_v34 = vpop.f32.mrf.mxu0  ;;  %v2033_v14 = vmax.f32 %v1931_v32, 0.0 }
 0x41e   : > { %v1993_v2 = vmax.f32 %v1700_v11, 0.0  ;;  %v1934_v17 = vadd.f32 %v3687_v34, %v4735_v5  ;;  %3720 = vmatprep.mubr.msk.bf16.mxu1 %vm2264_vm4, %v2081_v36  ;;  %v2067_v63 = vpack.c.bf16 %v1992_v62, %v1989_v59  ;;  %v2027_v29 = vmax.f32 %v1923_v39, 0.0 }
 0x41f   : > { %v1705_v40 = vpop.f32.mrf.mxu1  ;;  %v1925_v56 = vpop.f32.mrf.mxu0  ;;  %3721 = vmatmul.mubr.msk.bf16.gmra.mxu1 %vm2264_vm4, %v2084_v33  ;;  %v1704_v51 = vadd.f32 %v1703_v19, %v4733_v6 }
 0x420   : > { %v2068_v4 = vpack.c.bf16 %v1993_v2, %v1990_v28  ;;  %v1926_v22 = vadd.f32 %v1925_v56, %v4735_v5  ;;  %v2036_v60 = vmax.f32 %v1934_v17, 0.0  ;;  %v1706_v48 = vadd.f32 %v1705_v40, %v4731_v23 }
 0x421   : > { %v1707_v24 = vpop.f32.mrf.mxu1  ;;  %v3690_v15 = vpop.f32.mrf.mxu0  ;;  %v1995_v2 = vmax.f32 %v1704_v51, 0.0 }
 0x422   : > { %v1708_v37 = vadd.f32 %v1707_v24, %v4733_v6  ;;  %2393 = vmatprep.mubr.bf16.mxu0 %v2068_v4  ;;  %v2030_v12 = vmax.f32 %v1926_v22, 0.0  ;;  %v2090_v34 = vpack.c.bf16 %v2036_v60, %v2033_v14  ;;  %v1996_v33 = vmax.f32 %v1706_v48, 0.0 }
 0x423   : > { %v1709_v26 = vpop.f32.mrf.mxu1  ;;  %v1938_v58 = vpop.f32.mrf.mxu0  ;;  %2394 = vmatmul.mubr.bf16.gmra.mxu0 %v2067_v63  ;;  %v1947_v40 = vadd.f32 %v3690_v15, %v4735_v5 }
 0x424   : > { %v1710_v16 = vadd.f32 %v1709_v26, %v4731_v23  ;;  %v2087_v9 = vpack.c.bf16 %v2030_v12, %v2027_v29  ;;  %v1998_v25 = vmax.f32 %v1708_v37, 0.0  ;;  %v1939_v36 = vadd.f32 %v1938_v58, %v4735_v5 }
 0x425   : > { %v1713_v11 = vpop.f32.mrf.mxu1  ;;  %v3691_v28 = vpop.f32.mrf.mxu0  ;;  %v2045_v29 = vmax.f32 %v1947_v40, 0.0 }
 0x426   : > { %v1999_v62 = vmax.f32 %v1710_v16, 0.0  ;;  %v1950_v17 = vadd.f32 %v3691_v28, %v4735_v5  ;;  %3724 = vmatprep.mubr.msk.bf16.mxu1 %vm2264_vm4, %v2087_v9  ;;  %v2070_v32 = vpack.c.bf16 %v1998_v25, %v1995_v2  ;;  %v2039_v4 = vmax.f32 %v1939_v36, 0.0 }
 0x427   : > { %v1715_v19 = vpop.f32.mrf.mxu1  ;;  %v1941_v39 = vpop.f32.mrf.mxu0  ;;  %3725 = vmatmul.mubr.msk.bf16.gmra.mxu1 %vm2264_vm4, %v2090_v34  ;;  %v1714_v51 = vadd.f32 %v1713_v11, %v4733_v6 }
 0x428   : > { %v2071_v56 = vpack.c.bf16 %v1999_v62, %v1996_v33  ;;  %v1942_v59 = vadd.f32 %v1941_v39, %v4735_v5  ;;  %v2048_v24 = vmax.f32 %v1950_v17, 0.0  ;;  %v1716_v63 = vadd.f32 %v1715_v19, %v4731_v23 }
 0x429   : > { %v1717_v22 = vpop.f32.mrf.mxu1  ;;  %v2001_v25 = vmax.f32 %v1714_v51, 0.0 }
 0x42a   : > { %v2042_v60 = vmax.f32 %v1942_v59, 0.0  ;;  %v1718_v48 = vadd.f32 %v1717_v22, %v4733_v6  ;;  %2401 = vmatprep.mubr.bf16.mxu0 %v2071_v56  ;;  %v2096_v26 = vpack.c.bf16 %v2048_v24, %v2045_v29  ;;  %v2002_v58 = vmax.f32 %v1716_v63, 0.0 }
 0x42b   : > { %v1719_v37 = vpop.f32.mrf.mxu1  ;;  %2402 = vmatmul.mubr.bf16.gmra.mxu0 %v2070_v32 }
 0x42c   : > { %v2093_v15 = vpack.c.bf16 %v2042_v60, %v2039_v4  ;;  %v1720_v12 = vadd.f32 %v1719_v37, %v4731_v23  ;;  %v2004_v14 = vmax.f32 %v1718_v48, 0.0 }
 0x42d   : > { %v1723_v5 = vpop.f32.mrf.mxu1 }
 0x42e   : > { %v2005_v16 = vmax.f32 %v1720_v12, 0.0  ;;  %3728 = vmatprep.mubr.msk.bf16.mxu1 %vm2264_vm4, %v2093_v15  ;;  %v2073_v28 = vpack.c.bf16 %v2004_v14, %v2001_v25  ;;  %v1724_v2 = vadd.f32 %v1723_v5, %v4733_v6 }
 0x42f   : > { %v1725_v9 = vpop.f32.mrf.mxu1  ;;  %3729 = vmatmul.mubr.msk.bf16.gmra.mxu1 %vm2264_vm4, %v2096_v26 }
 0x430   : > { %v2074_v36 = vpack.c.bf16 %v2005_v16, %v2002_v58  ;;  %3734 = vmatprep.mubr.msk.f32.mxu1 %vm1055_vm2, %v4434_v54  ;;  %v1726_v34 = vadd.f32 %v1725_v9, %v4731_v23  ;;  %v2007_v32 = vmax.f32 %v1724_v2, 0.0 }
 0x431   : > { %v1727_v11 = vpop.f32.mrf.mxu1 }
 0x432   : > { %v1728_v33 = vadd.f32 %v1727_v11, %v4733_v6  ;;  %2409 = vmatprep.mubr.bf16.mxu0 %v2074_v36  ;;  %v2008_v39 = vmax.f32 %v1726_v34, 0.0 }
 0x433   : > { %v1729_v62 = vpop.f32.mrf.mxu1  ;;  %2410 = vmatmul.mubr.bf16.gmra.mxu0 %v2073_v28 }
 0x434   : > { %v1730_v17 = vadd.f32 %v1729_v62, %v4731_v23  ;;  %v2010_v40 = vmax.f32 %v1728_v33, 0.0 }
 0x435   : > { %v1733_v19 = vpop.f32.mrf.mxu1 }
 0x436   : > { %v2011_v56 = vmax.f32 %v1730_v17, 0.0  ;;  %v2076_v22 = vpack.c.bf16 %v2010_v40, %v2007_v32  ;;  %v1734_v48 = vadd.f32 %v1733_v19, %v4733_v6 }
 0x437   : > { %v1735_v59 = vpop.f32.mrf.mxu1  ;;  %3735 = vmatmul.mubr.msk.f32.vlgmr.msra.gmra.mxu1 %vm1055_vm2, %v4437_v45 }
 0x438   : > { %v2077_v54 = vpack.c.bf16 %v2011_v56, %v2008_v39  ;;  %3737 = vmatprep.mubr.msk.f32.mxu1 %vm1055_vm2, %v4440_v46  ;;  %v1736_v24 = vadd.f32 %v1735_v59, %v4731_v23  ;;  %v2013_v12 = vmax.f32 %v1734_v48, 0.0 }
 0x439   : > { %v1737_v4 = vpop.f32.mrf.mxu1 }
 0x43a   : > { %v1738_v63 = vadd.f32 %v1737_v4, %v4733_v6  ;;  %2417 = vmatprep.mubr.bf16.mxu0 %v2077_v54  ;;  %v2014_v46 = vmax.f32 %v1736_v24, 0.0 }
 0x43b   : > { %v1739_v60 = vpop.f32.mrf.mxu1  ;;  %2418 = vmatmul.mubr.bf16.gmra.mxu0 %v2076_v22  ;;  %3738 = vmatmul.mubr.msk.f32.gmra.mxu1 %vm1055_vm2, %v4431_v52 }
 0x43c   : > { %v1740_v37 = vadd.f32 %v1739_v60, %v4731_v23  ;;  %3740 = vmatprep.mubr.msk.f32.mxu1 %vm1055_vm2, %v4452_v57  ;;  %v2016_v29 = vmax.f32 %v1738_v63, 0.0 }
 0x43d   : > { %v1743_v45 = vpop.f32.mrf.mxu1 }
 0x43e   : > { %v2017_v51 = vmax.f32 %v1740_v37, 0.0  ;;  %v2079_v58 = vpack.c.bf16 %v2016_v29, %v2013_v12  ;;  %v1744_v16 = vadd.f32 %v1743_v45, %v4733_v6 }
 0x43f   : > { %v1745_v15 = vpop.f32.mrf.mxu1  ;;  %3741 = vmatmul.mubr.msk.f32.gmra.mxu1 %vm1055_vm2, %v4455_v42 }
 0x440   : > { %v2080_v5 = vpack.c.bf16 %v2017_v51, %v2014_v46  ;;  %3743 = vmatprep.mubr.msk.f32.mxu1 %vm1055_vm2, %v4460_v61  ;;  %v1746_v52 = vadd.f32 %v1745_v15, %v4731_v23  ;;  %v2019_v28 = vmax.f32 %v1744_v16, 0.0 }
 0x441   : > { %v1747_v26 = vpop.f32.mrf.mxu1 }
 0x442   : > { %v1748_v14 = vadd.f32 %v1747_v26, %v4733_v6  ;;  %2425 = vmatprep.mubr.bf16.mxu0 %v2080_v5  ;;  %v2020_v61 = vmax.f32 %v1746_v52, 0.0 }
 0x443   : > { %v1749_v57 = vpop.f32.mrf.mxu1  ;;  %2426 = vmatmul.mubr.bf16.gmra.mxu0 %v2079_v58  ;;  %3744 = vmatmul.mubr.msk.f32.gmra.mxu1 %vm1055_vm2, %v4463_v35 }
 0x444   : > { %v1750_v9 = vadd.f32 %v1749_v57, %v4731_v23  ;;  %3746 = vmatprep.mubr.msk.f32.mxu1 %vm1055_vm2, %v4470_v31  ;;  %v2022_v25 = vmax.f32 %v1748_v14, 0.0 }
 0x445   : > { %v1753_v42 = vpop.f32.mrf.mxu1 }
 0x446   : > { %v2023_v36 = vmax.f32 %v1750_v9, 0.0  ;;  %v2082_v62 = vpack.c.bf16 %v2022_v25, %v2019_v28  ;;  %v1754_v17 = vadd.f32 %v1753_v42, %v4733_v6 }
 0x447   : > { %v1755_v11 = vpop.f32.mrf.mxu1  ;;  %3747 = vmatmul.mubr.msk.f32.gmra.mxu1 %vm1055_vm2, %v4473_v21 }
 0x448   : > { %v2083_v34 = vpack.c.bf16 %v2023_v36, %v2020_v61  ;;  %3749 = vmatprep.mubr.msk.f32.mxu1 %vm1055_vm2, %v4478_v8  ;;  %v1756_v35 = vadd.f32 %v1755_v11, %v4731_v23  ;;  %v2025_v59 = vmax.f32 %v1754_v17, 0.0 }
 0x449   : > { %v1757_v33 = vpop.f32.mrf.mxu1 }
 0x44a   : > { %v1758_v2 = vadd.f32 %v1757_v33, %v4733_v6  ;;  %2433 = vmatprep.mubr.bf16.mxu0 %v2083_v34  ;;  %v2026_v8 = vmax.f32 %v1756_v35, 0.0 }
 0x44b   : > { %v1759_v31 = vpop.f32.mrf.mxu1  ;;  %2434 = vmatmul.mubr.bf16.gmra.mxu0 %v2082_v62  ;;  %3750 = vmatmul.mubr.msk.f32.gmra.mxu1 %vm1055_vm2, %v4481_v30 }
 0x44c   : > { %v1760_v19 = vadd.f32 %v1759_v31, %v4731_v23  ;;  %3752 = vmatprep.mubr.msk.f32.mxu1 %vm1055_vm2, %v4488_v18  ;;  %v2028_v39 = vmax.f32 %v1758_v2, 0.0 }
 0x44d   : > { %v1763_v21 = vpop.f32.mrf.mxu1 }
 0x44e   : > { %v2029_v40 = vmax.f32 %v1760_v19, 0.0  ;;  %v2085_v4 = vpack.c.bf16 %v2028_v39, %v2025_v59  ;;  %v1764_v24 = vadd.f32 %v1763_v21, %v4733_v6 }
 0x44f   : > { %v1765_v56 = vpop.f32.mrf.mxu1  ;;  %3753 = vmatmul.mubr.msk.f32.gmra.mxu1 %vm1055_vm2, %v4491_v13 }
 0x450   : > { %v2086_v32 = vpack.c.bf16 %v2029_v40, %v2026_v8  ;;  %3755 = vmatprep.mubr.msk.f32.mxu1 %vm1055_vm2, %v4496_v55  ;;  %v1766_v30 = vadd.f32 %v1765_v56, %v4731_v23  ;;  %v2031_v45 = vmax.f32 %v1764_v24, 0.0 }
 0x451   : > { %v1767_v54 = vpop.f32.mrf.mxu1 }
 0x452   : > { %v1768_v22 = vadd.f32 %v1767_v54, %v4733_v6  ;;  %2441 = vmatprep.mubr.bf16.mxu0 %v2086_v32  ;;  %v2032_v55 = vmax.f32 %v1766_v30, 0.0 }
 0x453   : > { %v1769_v18 = vpop.f32.mrf.mxu1  ;;  %2442 = vmatmul.mubr.bf16.gmra.mxu0 %v2085_v4  ;;  %3756 = vmatmul.mubr.msk.f32.gmra.mxu1 %vm1055_vm2, %v4499_v20 }
 0x454   : > { %v1770_v63 = vadd.f32 %v1769_v18, %v4731_v23  ;;  %3758 = vmatprep.mubr.msk.f32.mxu1 %vm1055_vm2, %v4506_v1  ;;  %v2034_v60 = vmax.f32 %v1768_v22, 0.0 }
 0x455   : > { %v1773_v13 = vpop.f32.mrf.mxu1 }
 0x456   : > { %v2035_v48 = vmax.f32 %v1770_v63, 0.0  ;;  %v2088_v51 = vpack.c.bf16 %v2034_v60, %v2031_v45  ;;  %v1774_v12 = vadd.f32 %v1773_v13, %v4733_v6 }
 0x457   : > { %v1775_v37 = vpop.f32.mrf.mxu1  ;;  %3759 = vmatmul.mubr.msk.f32.gmra.mxu1 %vm1055_vm2, %v4509_v53 }
 0x458   : > { %v2089_v46 = vpack.c.bf16 %v2035_v48, %v2032_v55  ;;  %3761 = vmatprep.mubr.msk.f32.mxu1 %vm1055_vm2, %v4514_v27  ;;  %v1776_v20 = vadd.f32 %v1775_v37, %v4731_v23  ;;  %v2037_v14 = vmax.f32 %v1774_v12, 0.0 }
 0x459   : > { %v1777_v29 = vpop.f32.mrf.mxu1 }
 0x45a   : > { %v1778_v15 = vadd.f32 %v1777_v29, %v4733_v6  ;;  %2449 = vmatprep.mubr.bf16.mxu0 %v2089_v46  ;;  %v2038_v27 = vmax.f32 %v1776_v20, 0.0 }
 0x45b   : > { %v1779_v1 = vpop.f32.mrf.mxu1  ;;  %2450 = vmatmul.mubr.bf16.gmra.mxu0 %v2088_v51  ;;  %3762 = vmatmul.mubr.msk.f32.gmra.mxu1 %vm1055_vm2, %v4517_v50 }
 0x45c   : > { %v1780_v5 = vadd.f32 %v1779_v1, %v4731_v23  ;;  %3764 = vmatprep.mubr.msk.f32.mxu1 %vm1055_vm2, %v4524_v49  ;;  %v2040_v26 = vmax.f32 %v1778_v15, 0.0 }
 0x45d   : > { %v1783_v53 = vpop.f32.mrf.mxu1 }
 0x45e   : > { %v2041_v58 = vmax.f32 %v1780_v5, 0.0  ;;  %v2091_v9 = vpack.c.bf16 %v2040_v26, %v2037_v14  ;;  %v1784_v61 = vadd.f32 %v1783_v53, %v4733_v6 }
 0x45f   : > { %v1785_v52 = vpop.f32.mrf.mxu1  ;;  %3765 = vmatmul.mubr.msk.f32.gmra.mxu1 %vm1055_vm2, %v4527_v10 }
 0x460   : > { %v2092_v57 = vpack.c.bf16 %v2041_v58, %v2038_v27  ;;  %3767 = vmatprep.mubr.msk.f32.mxu1 %vm1055_vm2, %v4532_v44  ;;  %v1786_v50 = vadd.f32 %v1785_v52, %v4731_v23  ;;  %v2043_v11 = vmax.f32 %v1784_v61, 0.0 }
 0x461   : > { %v1787_v16 = vpop.f32.mrf.mxu1 }
 0x462   : > { %v1788_v42 = vadd.f32 %v1787_v16, %v4733_v6  ;;  %2457 = vmatprep.mubr.bf16.mxu0 %v2092_v57  ;;  %v2044_v10 = vmax.f32 %v1786_v50, 0.0 }
 0x463   : > { %v1789_v49 = vpop.f32.mrf.mxu1  ;;  %2458 = vmatmul.mubr.bf16.gmra.mxu0 %v2091_v9  ;;  %3768 = vmatmul.mubr.msk.f32.gmra.mxu1 %vm1055_vm2, %v4535_v41  ;;  %v5278_v41 = vld [vmem:[#allocation16_spill] sm:$0xff] }
 0x464   : > { %v1790_v25 = vadd.f32 %v1789_v49, %v4731_v23  ;;  %3770 = vmatprep.mubr.msk.f32.mxu1 %vm1055_vm2, %v4542_v0  ;;  %v2046_v44 = vmax.f32 %v1788_v42, 0.0  ;;  %v5279_v0 = vld [vmem:[#allocation17_spill] sm:$0xff] }
 0x466   : > { %v2047_v36 = vmax.f32 %v1790_v25, 0.0  ;;  %v2094_v6 = vpack.c.bf16 %v2046_v44, %v2043_v11 }
 0x467   : > { %3771 = vmatmul.mubr.msk.f32.gmra.mxu1 %vm1055_vm2, %v4545_v7 }
 0x468   : > { %v2095_v28 = vpack.c.bf16 %v2047_v36, %v2044_v10  ;;  %3773 = vmatprep.mubr.msk.f32.mxu1 %vm1055_vm2, %v4550_v43 }
 0x46a   : > { %2465 = vmatprep.mubr.bf16.mxu0 %v2095_v28 }
 0x46b   : > { %2466 = vmatmul.mubr.bf16.gmra.mxu0 %v2094_v6  ;;  %3774 = vmatmul.mubr.msk.f32.gmra.mxu1 %vm1055_vm2, %v4553_v3 }
 0x46c   : > { %3776 = vmatprep.mubr.msk.f32.mxu1 %vm1055_vm2, %v4560_v38 }
 0x46f   : > { %3777 = vmatmul.mubr.msk.f32.gmra.mxu1 %vm1055_vm2, %v4563_v47 }
 0x470   : > { %3779 = vmatprep.mubr.msk.f32.mxu1 %vm1055_vm2, %v5278_v41  ;;  %v5016_v41 = vld [vmem:[%s5226_s8] ss:$0 sm:$0xff] }
 0x473   : > { %3780 = vmatmul.mubr.msk.f32.gmra.mxu1 %vm1055_vm2, %v5279_v0 }
 0x4b3   : > { %v3401_v7 = vpop.f32.mrf.mxu0 }
 0x4b4   : > { %v4915_v43 = vpop.f32.mrf.mxu1 }
 0x4b5   : > { %v3402_v23 = vpop.f32.mrf.mxu0 }
 0x4b6   : > { %v4917_v34 = vpop.f32.mrf.mxu1  ;;  %v3403_v6 = vadd.f32 %v3402_v23, %v3401_v7 }
 0x4b7   : > { %v3404_v33 = vpop.f32.mrf.mxu0 }
 0x4b8   : > { %v4919_v3 = vpop.f32.mrf.mxu1 }
 0x4b9   : > { %v3405_v62 = vpop.f32.mrf.mxu0 }
 0x4ba   : > { %v4923_v35 = vpop.f32.mrf.mxu1  ;;  %v3406_v36 = vadd.f32 %v3405_v62, %v3404_v33  ;;  %v2348_v62 = vadd.f32 %v3403_v6, %v5016_v41 }
 0x4bb   : > { %v4921_v38 = vpop.f32.mrf.mxu0 }
 0x4bd   : > { %v3408_v47 = vpop.f32.mrf.mxu0 }
 0x4be   : > { %v3409_v7 = vadd.f32 %v3408_v47, %v4921_v38  ;;  %v2509_v38 = vadd.f32 %v4917_v34, %v2348_v62 }
 0x4bf   : > { %v3410_v2 = vpop.f32.mrf.mxu0  ;;  %v4925_v31 = vpop.f32.mrf.mxu1 }
 0x4c0   : > { %v2356_v47 = vadd.f32 %v3409_v7, %v5016_v41 }
 0x4c1   : > { %v3411_v17 = vpop.f32.mrf.mxu0  ;;  %v4927_v19 = vpop.f32.mrf.mxu1 }
 0x4c3   : > { %v4929_v21 = vpop.f32.mrf.mxu1  ;;  %v4931_v8 = vpop.f32.mrf.mxu0 }
 0x4c5   : > { %v4933_v39 = vpop.f32.mrf.mxu1  ;;  %v4935_v40 = vpop.f32.mrf.mxu0 }
 0x4c7   : > { %v4937_v56 = vpop.f32.mrf.mxu1  ;;  %v3416_v59 = vpop.f32.mrf.mxu0 }
 0x4c9   : > { %v4939_v32 = vpop.f32.mrf.mxu1  ;;  %v3417_v54 = vpop.f32.mrf.mxu0 }
 0x4cb   : > { %v4941_v4 = vpop.f32.mrf.mxu1  ;;  %v4943_v30 = vpop.f32.mrf.mxu0 }
 0x4cd   : > { %v4945_v22 = vpop.f32.mrf.mxu1  ;;  %v4947_v18 = vpop.f32.mrf.mxu0 }
 0x4cf   : > { %v4949_v24 = vpop.f32.mrf.mxu1  ;;  %v3422_v63 = vpop.f32.mrf.mxu0 }
 0x4d1   : > { %v4951_v13 = vpop.f32.mrf.mxu1  ;;  %v3423_v55 = vpop.f32.mrf.mxu0 }
 0x4d3   : > { %v4953_v60 = vpop.f32.mrf.mxu1  ;;  %v4955_v48 = vpop.f32.mrf.mxu0 }
 0x4d5   : > { %v4957_v37 = vpop.f32.mrf.mxu1  ;;  %v4959_v45 = vpop.f32.mrf.mxu0 }
 0x4d7   : > { %v4961_v46 = vpop.f32.mrf.mxu0  ;;  %v4963_v29 = vpop.f32.mrf.mxu1 }
 0x4d9   : > { %v4965_v51 = vpop.f32.mrf.mxu0  ;;  %v4967_v20 = vpop.f32.mrf.mxu1 }
 0x4db   : > { %v4969_v15 = vpop.f32.mrf.mxu0  ;;  %v4971_v1 = vpop.f32.mrf.mxu1 }
 0x4dd   : > { %v4973_v12 = vpop.f32.mrf.mxu0  ;;  %v4975_v5 = vpop.f32.mrf.mxu1 }
 0x4df   : > { %v4977_v53 = vpop.f32.mrf.mxu0  ;;  %v4979_v27 = vpop.f32.mrf.mxu1 }
 0x4e0   : > { %5280 = vst [vmem:[#allocation3_spill] sm:$0xff] %v4979_v27 }
 0x4e1   : > { %v4981_v26 = vpop.f32.mrf.mxu0  ;;  %v4983_v58 = vpop.f32.mrf.mxu1 }
 0x4e3   : > { %v4985_v52 = vpop.f32.mrf.mxu0  ;;  %v4987_v14 = vpop.f32.mrf.mxu1 }
 0x4e4   : > { %5281 = vst [vmem:[#allocation2_spill] sm:$0xff] %v4987_v14 }
 0x4e5   : > { %v4989_v57 = vpop.f32.mrf.mxu0  ;;  %v4991_v16 = vpop.f32.mrf.mxu1 }
 0x4e7   : > { %v4993_v9 = vpop.f32.mrf.mxu0  ;;  %v4995_v50 = vpop.f32.mrf.mxu1 }
 0x4e8   : > { %5282 = vst [vmem:[#allocation5_spill] sm:$0xff] %v4995_v50 }
 0x4e9   : > { %v4997_v42 = vpop.f32.mrf.mxu0  ;;  %v4999_v49 = vpop.f32.mrf.mxu1 }
 0x4ea   : > { %5283 = vst [vmem:[#allocation4_spill] sm:$0xff] %v4999_v49  ;;  %v3412_v49 = vadd.f32 %v3411_v17, %v3410_v2 }
 0x4eb   : > { %v5001_v61 = vpop.f32.mrf.mxu0  ;;  %v5003_v25 = vpop.f32.mrf.mxu1 }
 0x4ec   : > { %5284 = vst [vmem:[#allocation7_spill] sm:$0xff] %v5003_v25  ;;  %v2351_v25 = vadd.f32 %v3406_v36, %v5016_v41  ;;  %v2359_v14 = vadd.f32 %v3412_v49, %v5016_v41  ;;  %v3424_v36 = vadd.f32 %v3423_v55, %v3422_v63 }
 0x4ed   : > { %v5005_v10 = vpop.f32.mrf.mxu0  ;;  %v5007_v44 = vpop.f32.mrf.mxu1 }
 0x4ee   : > { %5285 = vst [vmem:[#allocation6_spill] sm:$0xff] %v5007_v44  ;;  %v2512_v27 = vadd.f32 %v4923_v35, %v2351_v25  ;;  %v3415_v35 = vadd.f32 %v4935_v40, %v4931_v8  ;;  %v3421_v8 = vadd.f32 %v4947_v18, %v4943_v30 }
 0x4ef   : > { %v5009_v11 = vpop.f32.mrf.mxu0  ;;  %v5011_v28 = vpop.f32.mrf.mxu1 }
 0x4f0   : > { %5286 = vst [vmem:[#allocation9_spill] sm:$0xff] %v5011_v28  ;;  %v2364_v62 = vadd.f32 %v3415_v35, %v5016_v41 }
 0x4f1   : > { %v5018_v0 = vpop.f32.mrf.mxu0  ;;  %v5020_v50 = vpop.f32.mrf.mxu1 }
 0x4f2   : > { %5287 = vst [vmem:[#allocation8_spill] sm:$0xff] %v5020_v50  ;;  %v3418_v50 = vadd.f32 %v3417_v54, %v3416_v59 }
 0x4f3   : > { %v5023_v44 = vpop.f32.mrf.mxu0  ;;  %v5025_v33 = vpop.f32.mrf.mxu1 }
 0x4f4   : > { %5288 = vst [vmem:[#allocation11_spill] sm:$0xff] %v5025_v33  ;;  %v2367_v25 = vadd.f32 %v3418_v50, %v5016_v41  ;;  %v2520_v33 = vadd.f32 %v4919_v3, %v2359_v14  ;;  %v2375_v50 = vadd.f32 %v3424_v36, %v5016_v41  ;;  %v3430_v3 = vadd.f32 %v4965_v51, %v4961_v46 }
 0x4f5   : > { %v5029_v23 = vpop.f32.mrf.mxu0  ;;  %v5031_v28 = vpop.f32.mrf.mxu1 }
 0x4f6   : > { %5289 = vst [vmem:[#allocation10_spill] sm:$0xff] %v5031_v28  ;;  %v2528_v7 = vadd.f32 %v4933_v39, %v2367_v25  ;;  %v3436_v39 = vadd.f32 %v4981_v26, %v4977_v53 }
 0x4f7   : > { %v5042_v2 = vpop.f32.mrf.mxu0  ;;  %v3736_v17 = vpop.f32.mrf.mxu1 }
 0x4f8   : > { %v2962_v49 = vadd.f32 %v3736_v17, %v2512_v27  ;;  %v2517_v27 = vadd.f32 %v4915_v43, %v2356_v47  ;;  %v3427_v43 = vadd.f32 %v4959_v45, %v4955_v48  ;;  %v2383_v47 = vadd.f32 %v3430_v3, %v5016_v41 }
 0x4f9   : > { %v5048_v59 = vpop.f32.mrf.mxu0  ;;  %v2802_v54 = vpop.f32.mrf.mxu1 }
 0x4fa   : > { %2994 = vst.msk [vmem:[%s5040_s19 + $0x8] sm:$0xff] %vm2264_vm4, %v2962_v49  ;;  %v2961_v6 = vadd.f32 %v2802_v54, %v2509_v38  ;;  %v2525_v38 = vadd.f32 %v4927_v19, %v2364_v62  ;;  %v2536_v49 = vadd.f32 %v4929_v21, %v2375_v50  ;;  %v2380_v45 = vadd.f32 %v3427_v43, %v5016_v41 }
 0x4fb   : > { %v5054_v28 = vpop.f32.mrf.mxu0  ;;  %v3739_v34 = vpop.f32.mrf.mxu1  ;;  %v3433_v19 = vadd.f32 %v4973_v12, %v4969_v15  ;;  %v3442_v21 = vadd.f32 %v4997_v42, %v4993_v9  ;;  %v2544_v62 = vadd.f32 %v4945_v22, %v2383_v47  ;;  %v3448_v22 = vadd.f32 %v5018_v0, %v5009_v11 }
 0x4fc   : > { %2993 = vst.msk [vmem:[%s5040_s19] sm:$0xff] %vm2264_vm4, %v2961_v6  ;;  %v2964_v40 = vadd.f32 %v3739_v34, %v2520_v33  ;;  %v2372_v33 = vadd.f32 %v3421_v8, %v5016_v41  ;;  %v2391_v6 = vadd.f32 %v3436_v39, %v5016_v41 }
 0x4fd   : > { %v5062_v63 = vpop.f32.mrf.mxu0  ;;  %v2812_v55 = vpop.f32.mrf.mxu1  ;;  %v2388_v8 = vadd.f32 %v3433_v19, %v5016_v41  ;;  %v2399_v42 = vadd.f32 %v3442_v21, %v5016_v41  ;;  %v2407_v0 = vadd.f32 %v3448_v22, %v5016_v41 }
 0x4fe   : > { %2996 = vst.msk [vmem:[%s5040_s19 + $0x18] sm:$0xff] %vm2264_vm4, %v2964_v40  ;;  %v2963_v14 = vadd.f32 %v2812_v55, %v2517_v27  ;;  %v2533_v36 = vadd.f32 %v4925_v31, %v2372_v33  ;;  %v3439_v31 = vadd.f32 %v4989_v57, %v4985_v52  ;;  %v2541_v27 = vadd.f32 %v4939_v32, %v2380_v45 }
 0x4ff   : > { %v5070_v30 = vpop.f32.mrf.mxu0  ;;  %v3742_v18 = vpop.f32.mrf.mxu1  ;;  %v2552_v3 = vadd.f32 %v4941_v4, %v2391_v6  ;;  %v3445_v32 = vadd.f32 %v5005_v10, %v5001_v61  ;;  %v3454_v4 = vadd.f32 %v5048_v59, %v5042_v2 }
 0x500   : > { %2995 = vst.msk [vmem:[%s5040_s19 + $0x10] sm:$0xff] %vm2264_vm4, %v2963_v14  ;;  %v2966_v17 = vadd.f32 %v3742_v18, %v2528_v7  ;;  %v2396_v57 = vadd.f32 %v3439_v31, %v5016_v41  ;;  %v2549_v18 = vadd.f32 %v4937_v56, %v2388_v8  ;;  %v3451_v56 = vadd.f32 %v5029_v23, %v5023_v44 }
 0x501   : > { %v3459_v46 = vpop.f32.mrf.mxu0  ;;  %v2822_v51 = vpop.f32.mrf.mxu1  ;;  %v2404_v10 = vadd.f32 %v3445_v32, %v5016_v41  ;;  %v2415_v59 = vadd.f32 %v3454_v4, %v5016_v41  ;;  %v5290_v4 = vld [vmem:[#allocation2_spill] sm:$0xff] }
 0x502   : > { %2998 = vst.msk [vmem:[%s5040_s19 + $0x28] sm:$0xff] %vm2264_vm4, %v2966_v17  ;;  %v2965_v35 = vadd.f32 %v2822_v51, %v2525_v38  ;;  %v2560_v17 = vadd.f32 %v4957_v37, %v2399_v42  ;;  %v2557_v47 = vadd.f32 %v4951_v13, %v2396_v57  ;;  %v3460_v37 = vadd.f32 %v3459_v46, %v5070_v30 }
 0x503   : > { %v5084_v54 = vpop.f32.mrf.mxu0  ;;  %v3745_v48 = vpop.f32.mrf.mxu1  ;;  %v2412_v44 = vadd.f32 %v3451_v56, %v5016_v41  ;;  %v3457_v13 = vadd.f32 %v5062_v63, %v5054_v28  ;;  %v2565_v19 = vadd.f32 %v4949_v24, %v2404_v10  ;;  %v5291_v56 = vld [vmem:[#allocation3_spill] sm:$0xff] }
 0x504   : > { %2997 = vst.msk [vmem:[%s5040_s19 + $0x20] sm:$0xff] %vm2264_vm4, %v2965_v35  ;;  %v2968_v25 = vadd.f32 %v3745_v48, %v2536_v49  ;;  %v2568_v49 = vadd.f32 %v4953_v60, %v2407_v0  ;;  %v2423_v46 = vadd.f32 %v3460_v37, %v5016_v41  ;;  %v5292_v37 = vld [vmem:[#allocation6_spill] sm:$0xff] }
 0x505   : > { %v5092_v53 = vpop.f32.mrf.mxu0  ;;  %v2832_v26 = vpop.f32.mrf.mxu1  ;;  %v2420_v28 = vadd.f32 %v3457_v13, %v5016_v41 }
 0x506   : > { %3000 = vst.msk [vmem:[%s5040_s19 + $0x38] sm:$0xff] %vm2264_vm4, %v2968_v25  ;;  %v2967_v34 = vadd.f32 %v2832_v26, %v2533_v36  ;;  %v2576_v26 = vadd.f32 %v4975_v5, %v2415_v59  ;;  %v3463_v63 = vadd.f32 %v5092_v53, %v5084_v54  ;;  %v2584_v31 = vadd.f32 %v4971_v1, %v2423_v46 }
 0x507   : > { %v3464_v15 = vpop.f32.mrf.mxu0  ;;  %v3748_v12 = vpop.f32.mrf.mxu1 }
 0x508   : > { %2999 = vst.msk [vmem:[%s5040_s19 + $0x30] sm:$0xff] %vm2264_vm4, %v2967_v34  ;;  %v2970_v40 = vadd.f32 %v3748_v12, %v2544_v62  ;;  %v2573_v34 = vadd.f32 %v4967_v20, %v2412_v44  ;;  %v2428_v54 = vadd.f32 %v3463_v63, %v5016_v41 }
 0x509   : > { %v3465_v55 = vpop.f32.mrf.mxu0  ;;  %v2842_v9 = vpop.f32.mrf.mxu1 }
 0x50a   : > { %3002 = vst.msk [vmem:[%s5040_s19 + $0x48] sm:$0xff] %vm2264_vm4, %v2970_v40  ;;  %v2969_v50 = vadd.f32 %v2842_v9, %v2541_v27  ;;  %v3466_v36 = vadd.f32 %v3465_v55, %v3464_v15  ;;  %v2581_v55 = vadd.f32 %v4963_v29, %v2420_v28 }
 0x50b   : > { %v3467_v14 = vpop.f32.mrf.mxu0  ;;  %v3751_v52 = vpop.f32.mrf.mxu1 }
 0x50c   : > { %3001 = vst.msk [vmem:[%s5040_s19 + $0x40] sm:$0xff] %vm2264_vm4, %v2969_v50  ;;  %v2972_v7 = vadd.f32 %v3751_v52, %v2552_v3  ;;  %v2431_v12 = vadd.f32 %v3466_v36, %v5016_v41 }
 0x50d   : > { %v3468_v33 = vpop.f32.mrf.mxu0  ;;  %v2852_v11 = vpop.f32.mrf.mxu1 }
 0x50e   : > { %3004 = vst.msk [vmem:[%s5040_s19 + $0x58] sm:$0xff] %vm2264_vm4, %v2972_v7  ;;  %v2971_v43 = vadd.f32 %v2852_v11, %v2549_v18  ;;  %v3469_v53 = vadd.f32 %v3468_v33, %v3467_v14  ;;  %v2592_v3 = vadd.f32 %v4991_v16, %v2431_v12  ;;  %v2589_v7 = vadd.f32 %v4983_v58, %v2428_v54 }
 0x50f   : > { %v3470_v38 = vpop.f32.mrf.mxu0  ;;  %v3754_v61 = vpop.f32.mrf.mxu1 }
 0x510   : > { %3003 = vst.msk [vmem:[%s5040_s19 + $0x50] sm:$0xff] %vm2264_vm4, %v2971_v43  ;;  %v2974_v51 = vadd.f32 %v3754_v61, %v2560_v17  ;;  %v2436_v14 = vadd.f32 %v3469_v53, %v5016_v41 }
 0x511   : > { %v3471_v39 = vpop.f32.mrf.mxu0  ;;  %v2862_v2 = vpop.f32.mrf.mxu1 }
 0x512   : > { %3006 = vst.msk [vmem:[%s5040_s19 + $0x68] sm:$0xff] %vm2264_vm4, %v2974_v51  ;;  %v2973_v35 = vadd.f32 %v2862_v2, %v2557_v47  ;;  %v3472_v8 = vadd.f32 %v3471_v39, %v3470_v38  ;;  %v2597_v51 = vadd.f32 %v5291_v56, %v2436_v14 }
 0x513   : > { %v3473_v48 = vpop.f32.mrf.mxu0  ;;  %v3757_v45 = vpop.f32.mrf.mxu1 }
 0x514   : > { %3005 = vst.msk [vmem:[%s5040_s19 + $0x60] sm:$0xff] %vm2264_vm4, %v2973_v35  ;;  %v2976_v23 = vadd.f32 %v3757_v45, %v2568_v49  ;;  %v2439_v22 = vadd.f32 %v3472_v8, %v5016_v41 }
 0x515   : > { %v3474_v25 = vpop.f32.mrf.mxu0  ;;  %v2872_v30 = vpop.f32.mrf.mxu1 }
 0x516   : > { %3008 = vst.msk [vmem:[%s5040_s19 + $0x78] sm:$0xff] %vm2264_vm4, %v2976_v23  ;;  %v2975_v60 = vadd.f32 %v2872_v30, %v2565_v19  ;;  %v3475_v32 = vadd.f32 %v3474_v25, %v3473_v48  ;;  %v2600_v43 = vadd.f32 %v5290_v4, %v2439_v22  ;;  %v5293_v23 = vld [vmem:[#allocation4_spill] sm:$0xff] }
 0x517   : > { %v3476_v6 = vpop.f32.mrf.mxu0  ;;  %v3760_v21 = vpop.f32.mrf.mxu1 }
 0x518   : > { %3007 = vst.msk [vmem:[%s5040_s19 + $0x70] sm:$0xff] %vm2264_vm4, %v2975_v60  ;;  %v2978_v24 = vadd.f32 %v3760_v21, %v2576_v26  ;;  %v2444_v61 = vadd.f32 %v3475_v32, %v5016_v41  ;;  %v5294_v60 = vld [vmem:[#allocation7_spill] sm:$0xff] }
 0x519   : > { %v3477_v62 = vpop.f32.mrf.mxu0  ;;  %v2882_v15 = vpop.f32.mrf.mxu1 }
 0x51a   : > { %3010 = vst.msk [vmem:[%s5040_s19 + $0x88] sm:$0xff] %vm2264_vm4, %v2978_v24  ;;  %v2977_v5 = vadd.f32 %v2882_v15, %v2573_v34  ;;  %v3478_v50 = vadd.f32 %v3477_v62, %v3476_v6  ;;  %v2605_v19 = vadd.f32 %v5293_v23, %v2444_v61  ;;  %v5295_v34 = vld [vmem:[#allocation5_spill] sm:$0xff] }
 0x51b   : > { %v3479_v40 = vpop.f32.mrf.mxu0  ;;  %v3763_v27 = vpop.f32.mrf.mxu1 }
 0x51c   : > { %3009 = vst.msk [vmem:[%s5040_s19 + $0x80] sm:$0xff] %vm2264_vm4, %v2977_v5  ;;  %v2980_v20 = vadd.f32 %v3763_v27, %v2584_v31  ;;  %v2447_v11 = vadd.f32 %v3478_v50, %v5016_v41  ;;  %v5296_v31 = vld [vmem:[#allocation10_spill] sm:$0xff] }
 0x51d   : > { %v3480_v9 = vpop.f32.mrf.mxu0  ;;  %v2892_v42 = vpop.f32.mrf.mxu1 }
 0x51e   : > { %3012 = vst.msk [vmem:[%s5040_s19 + $0x98] sm:$0xff] %vm2264_vm4, %v2980_v20  ;;  %v2979_v1 = vadd.f32 %v2892_v42, %v2581_v55  ;;  %v3481_v10 = vadd.f32 %v3480_v9, %v3479_v40  ;;  %v2608_v35 = vadd.f32 %v5292_v37, %v2447_v11  ;;  %v5297_v55 = vld [vmem:[#allocation8_spill] sm:$0xff] }
 0x51f   : > { %v3482_v52 = vpop.f32.mrf.mxu0  ;;  %v3766_v57 = vpop.f32.mrf.mxu1 }
 0x520   : > { %3011 = vst.msk [vmem:[%s5040_s19 + $0x90] sm:$0xff] %vm2264_vm4, %v2979_v1  ;;  %v2982_v29 = vadd.f32 %v3766_v57, %v2592_v3  ;;  %v2452_v45 = vadd.f32 %v3481_v10, %v5016_v41  ;;  %v5298_v57 = vld [vmem:[#allocation9_spill] sm:$0xff] }
 0x521   : > { %v3483_v18 = vpop.f32.mrf.mxu0  ;;  %v2902_v33 = vpop.f32.mrf.mxu1 }
 0x522   : > { %3014 = vst.msk [vmem:[%s5040_s19 + $0xa8] sm:$0xff] %vm2264_vm4, %v2982_v29  ;;  %v3484_v0 = vadd.f32 %v3483_v18, %v3482_v52  ;;  %v2981_v16 = vadd.f32 %v2902_v33, %v2589_v7  ;;  %v2613_v62 = vadd.f32 %v5295_v34, %v2452_v45  ;;  %v5299_v29 = vld [vmem:[#allocation11_spill] sm:$0xff] }
 0x523   : > { %v3485_v17 = vpop.f32.mrf.mxu0  ;;  %v3769_v38 = vpop.f32.mrf.mxu1 }
 0x524   : > { %3013 = vst.msk [vmem:[%s5040_s19 + $0xa0] sm:$0xff] %vm2264_vm4, %v2981_v16  ;;  %v2984_v58 = vadd.f32 %v3769_v38, %v2600_v43  ;;  %v2455_v2 = vadd.f32 %v3484_v0, %v5016_v41 }
 0x525   : > { %v3486_v47 = vpop.f32.mrf.mxu0  ;;  %v2912_v39 = vpop.f32.mrf.mxu1 }
 0x526   : > { %3016 = vst.msk [vmem:[%s5040_s19 + $0xb8] sm:$0xff] %vm2264_vm4, %v2984_v58  ;;  %v2983_v59 = vadd.f32 %v2912_v39, %v2597_v51  ;;  %v3487_v44 = vadd.f32 %v3486_v47, %v3485_v17  ;;  %v2616_v26 = vadd.f32 %v5294_v60, %v2455_v2 }
 0x527   : > { %v3488_v49 = vpop.f32.mrf.mxu0  ;;  %v3772_v48 = vpop.f32.mrf.mxu1 }
 0x528   : > { %3015 = vst.msk [vmem:[%s5040_s19 + $0xb0] sm:$0xff] %vm2264_vm4, %v2983_v59  ;;  %v2986_v13 = vadd.f32 %v3772_v48, %v2608_v35  ;;  %v2460_v28 = vadd.f32 %v3487_v44, %v5016_v41 }
 0x529   : > { %v3489_v25 = vpop.f32.mrf.mxu0  ;;  %v2922_v30 = vpop.f32.mrf.mxu1 }
 0x52a   : > { %3018 = vst.msk [vmem:[%s5040_s19 + $0xc8] sm:$0xff] %vm2264_vm4, %v2986_v13  ;;  %v3490_v46 = vadd.f32 %v3489_v25, %v3488_v49  ;;  %v2985_v36 = vadd.f32 %v2922_v30, %v2605_v19  ;;  %v2621_v9 = vadd.f32 %v5297_v55, %v2460_v28 }
 0x52b   : > { %v3491_v6 = vpop.f32.mrf.mxu0  ;;  %v3775_v21 = vpop.f32.mrf.mxu1 }
 0x52c   : > { %v2463_v63 = vadd.f32 %v3490_v46, %v5016_v41  ;;  %3017 = vst.msk [vmem:[%s5040_s19 + $0xc0] sm:$0xff] %vm2264_vm4, %v2985_v36  ;;  %v2988_v24 = vadd.f32 %v3775_v21, %v2616_v26 }
 0x52d   : > { %v3492_v15 = vpop.f32.mrf.mxu0  ;;  %v2932_v12 = vpop.f32.mrf.mxu1 }
 0x52e   : > { %3020 = vst.msk [vmem:[%s5040_s19 + $0xd8] sm:$0xff] %vm2264_vm4, %v2988_v24  ;;  %v3493_v8 = vadd.f32 %v3492_v15, %v3491_v6  ;;  %v2987_v5 = vadd.f32 %v2932_v12, %v2613_v62  ;;  %v2624_v40 = vadd.f32 %v5296_v31, %v2463_v63 }
 0x52f   : > { %v3494_v27 = vpop.f32.mrf.mxu0  ;;  %v3778_v54 = vpop.f32.mrf.mxu1 }
 0x530   : > { %v2468_v53 = vadd.f32 %v3493_v8, %v5016_v41  ;;  %3019 = vst.msk [vmem:[%s5040_s19 + $0xd0] sm:$0xff] %vm2264_vm4, %v2987_v5  ;;  %v2990_v20 = vadd.f32 %v3778_v54, %v2624_v40 }
 0x531   : > { %v3495_v42 = vpop.f32.mrf.mxu0  ;;  %v2942_v22 = vpop.f32.mrf.mxu1 }
 0x532   : > { %3022 = vst.msk [vmem:[%s5040_s19 + $0xe8] sm:$0xff] %vm2264_vm4, %v2990_v20  ;;  %v3496_v50 = vadd.f32 %v3495_v42, %v3494_v27  ;;  %v2989_v1 = vadd.f32 %v2942_v22, %v2621_v9  ;;  %v2629_v14 = vadd.f32 %v5298_v57, %v2468_v53 }
 0x533   : > { %v3781_v3 = vpop.f32.mrf.mxu1 }
 0x534   : > { %v2471_v52 = vadd.f32 %v3496_v50, %v5016_v41  ;;  %3021 = vst.msk [vmem:[%s5040_s19 + $0xe0] sm:$0xff] %vm2264_vm4, %v2989_v1 }
 0x535   : > { %v2952_v32 = vpop.f32.mrf.mxu1 }
 0x536   : > { %v2632_v7 = vadd.f32 %v5299_v29, %v2471_v52  ;;  %v2991_v18 = vadd.f32 %v2952_v32, %v2629_v14 }
 0x538   : > { %v2992_v33 = vadd.f32 %v3781_v3, %v2632_v7  ;;  %3023 = vst.msk [vmem:[%s5040_s19 + $0xf0] sm:$0xff] %vm2264_vm4, %v2991_v18 }
 0x53a   : > { %3024 = vst.msk [vmem:[%s5040_s19 + $0xf8] sm:$0xff] %vm2264_vm4, %v2992_v33 }
 0x53b PF: > { %s20_s15 = sadd.s32 1, %s3990_s15   ;;  %s5300_s13 = smov %s3986_s14 }
 0x53c   : > { %p17_p5 = scmp.ge.s32.totalorder %s20_s15, 4   ;;  %s5301_s14 = smov %s5303_s16 }
 0x53e   :  { %19 = sbr.rel (!%p17_p5) target bundleno = 2 (0x2), region = 96 }

</bundles_post_ra>
